<compile_context>
chip_gen: v5e
topology: v5e:2x2
jax: 0.10.0
libtpu: 0.0.40
codegen_flags: <defaults>
</compile_context>

<pallas_src>
import jax
import jax.numpy as jnp
from jax.experimental import pallas as pl
from jax.experimental.pallas import tpu as pltpu

# Small, BERT-like configuration (synthetic).
B = 2               # batch
S = 8               # sequence length
H = 32              # hidden size
NUM_HEADS = 4
HEAD_DIM = H // NUM_HEADS
FFN = 4 * H         # intermediate size (= 128)
NUM_LAYERS = 2      # encoder layers fused into one pallas_call
EPS = 1e-12         # BERT LayerNorm eps
BS = B * S          # flattened tokens

# Rows of the per-layer (8, FFN) = (8, 128) f32 vector slab.
(ROW_BQKV, ROW_BO, ROW_LN1G, ROW_LN1B,
 ROW_B1, ROW_B2, ROW_LN2G, ROW_LN2B) = range(8)


def _layer_norm(x, gamma, beta):
    mu = jnp.mean(x, axis=-1, keepdims=True)
    var = jnp.mean(jnp.square(x - mu), axis=-1, keepdims=True)
    return (x - mu) * jax.lax.rsqrt(var + EPS) * gamma + beta


def bert_encoder_kernel(x_ref, wqkv_ref, wo_ref, w1_ref, w2_ref, vec_ref, out_ref):
    h = x_ref[...]                                   # (BS, H) f32

    for layer in range(NUM_LAYERS):                  # static unroll, all slabs in VMEM
        wqkv = wqkv_ref[layer]                       # (H, 3H)   bf16 (scale pre-folded into Q)
        wo = wo_ref[layer]                           # (H, H)    bf16
        w1 = w1_ref[layer]                           # (H, FFN)  bf16
        w2 = w2_ref[layer]                           # (FFN, H)  bf16
        vec = vec_ref[layer]                         # (8, FFN)  f32

        b_qkv = vec[ROW_BQKV:ROW_BQKV + 1, :3 * H]
        b_o = vec[ROW_BO:ROW_BO + 1, :H]
        ln1_g = vec[ROW_LN1G:ROW_LN1G + 1, :H]
        ln1_b = vec[ROW_LN1B:ROW_LN1B + 1, :H]
        b_1 = vec[ROW_B1:ROW_B1 + 1, :FFN]
        b_2 = vec[ROW_B2:ROW_B2 + 1, :H]
        ln2_g = vec[ROW_LN2G:ROW_LN2G + 1, :H]
        ln2_b = vec[ROW_LN2B:ROW_LN2B + 1, :H]

        # --- Fused QKV projection: one bf16 MXU pass (f32 accumulation) ---
        qkv = jnp.dot(h.astype(jnp.bfloat16), wqkv,
                      preferred_element_type=jnp.float32) + b_qkv      # (BS, 3H)
        q = qkv[:, 0:H].reshape(B, S, H)
        k = qkv[:, H:2 * H].reshape(B, S, H)
        v = qkv[:, 2 * H:3 * H].reshape(B, S, H)

        # Gather heads into the leading batch axis (head-major): (NH*B, S, HD).
        # Lane slices + leading-axis concat (cheap, well-supported relayout).
        def heads(t):
            return jnp.concatenate(
                [t[:, :, hh * HEAD_DIM:(hh + 1) * HEAD_DIM] for hh in range(NUM_HEADS)],
                axis=0)

        qh = heads(q).astype(jnp.bfloat16)
        kh = heads(k).astype(jnp.bfloat16)
        vh = heads(v).astype(jnp.bfloat16)

        # --- All heads in two batched bf16 einsums (scale already folded) ---
        s = jnp.einsum('bqd,bkd->bqk', qh, kh,
                       preferred_element_type=jnp.float32)             # (NH*B, S, S)
        s = s - jnp.max(s, axis=-1, keepdims=True)
        p = jnp.exp(s)                                                 # f32 elementwise
        p = p * pl.reciprocal(jnp.sum(p, axis=-1, keepdims=True), approx=True)
        ctx = jnp.einsum('bqk,bkd->bqd', p.astype(jnp.bfloat16), vh,
                         preferred_element_type=jnp.float32)           # (NH*B, S, HD)

        # Merge heads back to (BS, H) lanes (head 0 in lanes 0:8, etc.).
        ctx = jnp.concatenate(
            [ctx[hh * B:(hh + 1) * B] for hh in range(NUM_HEADS)],
            axis=-1).reshape(BS, H)

        attn = jnp.dot(ctx.astype(jnp.bfloat16), wo,
                       preferred_element_type=jnp.float32) + b_o
        h1 = _layer_norm(h + attn, ln1_g, ln1_b)                        # f32

        # --- Feed-forward (tanh GELU -> EUP) ---
        ff = jnp.dot(h1.astype(jnp.bfloat16), w1,
                     preferred_element_type=jnp.float32) + b_1
        ff = jax.nn.gelu(ff, approximate=True)
        ff = jnp.dot(ff.astype(jnp.bfloat16), w2,
                     preferred_element_type=jnp.float32) + b_2

        h = _layer_norm(h1 + ff, ln2_g, ln2_b)

    out_ref[...] = h


def make_params(key):
    """Build per-layer parameter stacks. Returns (kernel_params, ref_params_f32)."""
    def dense(k, shape, scale=0.02):
        return jax.random.normal(k, shape, jnp.float32) * scale

    att_scale = 1.0 / (HEAD_DIM ** 0.5)
    wqkv_l, wo_l, w1_l, w2_l, vec_l = [], [], [], [], []

    for lk in jax.random.split(key, NUM_LAYERS):
        ks = jax.random.split(lk, 12)
        wq, wk, wv, wo = (dense(ks[i], (H, H)) for i in range(4))
        w1 = dense(ks[4], (H, FFN))
        w2 = dense(ks[5], (FFN, H))
        b_q, b_k, b_v, b_o, b_2 = (dense(ks[i], (H,)) for i in (6, 7, 8, 9, 11))
        b_1 = dense(ks[10], (FFN,))

        # Fold 1/sqrt(HEAD_DIM) attention scale into Q projection (free, host-side).
        wqkv = jnp.concatenate([wq * att_scale, wk, wv], axis=1)        # (H, 3H)
        b_qkv = jnp.concatenate([b_q * att_scale, b_k, b_v], axis=0)    # (3H,)

        vec = jnp.zeros((8, FFN), jnp.float32)
        vec = vec.at[ROW_BQKV, :3 * H].set(b_qkv)
        vec = vec.at[ROW_BO, :H].set(b_o)
        vec = vec.at[ROW_LN1G, :H].set(1.0)
        vec = vec.at[ROW_B1, :FFN].set(b_1)
        vec = vec.at[ROW_B2, :H].set(b_2)
        vec = vec.at[ROW_LN2G, :H].set(1.0)

        wqkv_l.append(wqkv); wo_l.append(wo); w1_l.append(w1)
        w2_l.append(w2); vec_l.append(vec)

    wqkv_f, wo_f = jnp.stack(wqkv_l), jnp.stack(wo_l)
    w1_f, w2_f, vec_f = jnp.stack(w1_l), jnp.stack(w2_l), jnp.stack(vec_l)

    kernel_params = (wqkv_f.astype(jnp.bfloat16), wo_f.astype(jnp.bfloat16),
                     w1_f.astype(jnp.bfloat16), w2_f.astype(jnp.bfloat16), vec_f)
    ref_params = (wqkv_f, wo_f, w1_f, w2_f, vec_f)
    return kernel_params, ref_params


@jax.jit
def dgrn_encoder_forward(x, wqkv, wo, w1, w2, vec):
    """x: (B, S, H) float32 hidden states. Returns (B, S, H) float32."""
    x2d = x.reshape(BS, H)
    vmem = pl.BlockSpec(memory_space=pltpu.MemorySpace.VMEM)
    out2d = pl.pallas_call(
        bert_encoder_kernel,
        out_shape=jax.ShapeDtypeStruct((BS, H), jnp.float32),
        in_specs=[vmem] * 6,
        out_specs=vmem,
    )(x2d, wqkv, wo, w1, w2, vec)
    return out2d.reshape(B, S, H)


def reference_forward(x, ref_params):
    """Pure-JAX f32 reference (same math, exact reciprocal)."""
    wqkv, wo, w1, w2, vec = ref_params
    h = x.reshape(BS, H)
    for l in range(NUM_LAYERS):
        b_qkv = vec[l, ROW_BQKV, :3 * H]
        b_o = vec[l, ROW_BO, :H]
        ln1_g, ln1_b = vec[l, ROW_LN1G, :H], vec[l, ROW_LN1B, :H]
        b_1, b_2 = vec[l, ROW_B1, :FFN], vec[l, ROW_B2, :H]
        ln2_g, ln2_b = vec[l, ROW_LN2G, :H], vec[l, ROW_LN2B, :H]

        qkv = h @ wqkv[l] + b_qkv
        def split(t):
            return t.reshape(B, S, NUM_HEADS, HEAD_DIM).transpose(0, 2, 1, 3)
        q, k, v = split(qkv[:, :H]), split(qkv[:, H:2 * H]), split(qkv[:, 2 * H:])
        s = jnp.einsum('bhqd,bhkd->bhqk', q, k)
        p = jax.nn.softmax(s, axis=-1)
        ctx = jnp.einsum('bhqk,bhkd->bhqd', p, v)
        ctx = ctx.transpose(0, 2, 1, 3).reshape(BS, H)
        attn = ctx @ wo[l] + b_o
        h1 = _layer_norm(h + attn, ln1_g, ln1_b)
        ff = jax.nn.gelu(h1 @ w1[l] + b_1, approximate=True)
        ff = ff @ w2[l] + b_2
        h = _layer_norm(h1 + ff, ln2_g, ln2_b)
    return h.reshape(B, S, H)


if __name__ == "__main__":
    key = jax.random.PRNGKey(0)
    k_x, k_p = jax.random.split(key)
    x = jax.random.normal(k_x, (B, S, H), jnp.float32)
    kernel_params, ref_params = make_params(k_p)

    out = dgrn_encoder_forward(x, *kernel_params)
    jax.block_until_ready(out)

    assert out.shape == (B, S, H) and out.dtype == jnp.float32
    assert bool(jnp.all(jnp.isfinite(out)))

    ref = reference_forward(x, ref_params)
    max_err = float(jnp.max(jnp.abs(out - ref)))
    assert max_err < 5e-2, f"max abs error vs f32 reference: {max_err}"

    print("KERNEL_OK")
</pallas_src>

<mosaic_0001>
module attributes {stable_mosaic.version = 11 : i64} {
  func.func @bert_encoder_kernel(%arg0: memref<16x32xf32, #tpu.memory_space<vmem>>, %arg1: memref<2x32x96xbf16, #tpu.memory_space<vmem>>, %arg2: memref<2x32x32xbf16, #tpu.memory_space<vmem>>, %arg3: memref<2x32x128xbf16, #tpu.memory_space<vmem>>, %arg4: memref<2x128x32xbf16, #tpu.memory_space<vmem>>, %arg5: memref<2x8x128xf32, #tpu.memory_space<vmem>>, %arg6: memref<16x32xf32, #tpu.memory_space<vmem>>) attributes {dimension_semantics = [], scalar_prefetch = 0 : i64, scratch_operands = 0 : i64, tpu.core_type = #tpu.core_type<tc>} {
    %c0 = arith.constant 0 : index
    %c0_0 = arith.constant 0 : index
    %0 = vector.load %arg0[%c0, %c0_0] : memref<16x32xf32, #tpu.memory_space<vmem>>, vector<16x32xf32>
    %c0_1 = arith.constant 0 : index
    %c0_2 = arith.constant 0 : index
    %c0_3 = arith.constant 0 : index
    %1 = vector.load %arg1[%c0_1, %c0_2, %c0_3] : memref<2x32x96xbf16, #tpu.memory_space<vmem>>, vector<1x32x96xbf16>
    %2 = vector.shape_cast %1 : vector<1x32x96xbf16> to vector<32x96xbf16>
    %c0_4 = arith.constant 0 : index
    %c0_5 = arith.constant 0 : index
    %c0_6 = arith.constant 0 : index
    %3 = vector.load %arg2[%c0_4, %c0_5, %c0_6] : memref<2x32x32xbf16, #tpu.memory_space<vmem>>, vector<1x32x32xbf16>
    %4 = vector.shape_cast %3 : vector<1x32x32xbf16> to vector<32x32xbf16>
    %c0_7 = arith.constant 0 : index
    %c0_8 = arith.constant 0 : index
    %c0_9 = arith.constant 0 : index
    %5 = vector.load %arg3[%c0_7, %c0_8, %c0_9] : memref<2x32x128xbf16, #tpu.memory_space<vmem>>, vector<1x32x128xbf16>
    %6 = vector.shape_cast %5 : vector<1x32x128xbf16> to vector<32x128xbf16>
    %c0_10 = arith.constant 0 : index
    %c0_11 = arith.constant 0 : index
    %c0_12 = arith.constant 0 : index
    %7 = vector.load %arg4[%c0_10, %c0_11, %c0_12] : memref<2x128x32xbf16, #tpu.memory_space<vmem>>, vector<1x128x32xbf16>
    %8 = vector.shape_cast %7 : vector<1x128x32xbf16> to vector<128x32xbf16>
    %c0_13 = arith.constant 0 : index
    %c0_14 = arith.constant 0 : index
    %c0_15 = arith.constant 0 : index
    %9 = vector.load %arg5[%c0_13, %c0_14, %c0_15] : memref<2x8x128xf32, #tpu.memory_space<vmem>>, vector<1x8x128xf32>
    %10 = vector.shape_cast %9 : vector<1x8x128xf32> to vector<8x128xf32>
    %11 = vector.extract_strided_slice %10 {offsets = [0, 0], sizes = [1, 96], strides = [1, 1]} : vector<8x128xf32> to vector<1x96xf32>
    %12 = vector.extract_strided_slice %10 {offsets = [1, 0], sizes = [1, 32], strides = [1, 1]} : vector<8x128xf32> to vector<1x32xf32>
    %13 = vector.extract_strided_slice %10 {offsets = [2, 0], sizes = [1, 32], strides = [1, 1]} : vector<8x128xf32> to vector<1x32xf32>
    %14 = vector.extract_strided_slice %10 {offsets = [3, 0], sizes = [1, 32], strides = [1, 1]} : vector<8x128xf32> to vector<1x32xf32>
    %15 = vector.extract_strided_slice %10 {offsets = [4, 0], sizes = [1, 128], strides = [1, 1]} : vector<8x128xf32> to vector<1x128xf32>
    %16 = vector.extract_strided_slice %10 {offsets = [5, 0], sizes = [1, 32], strides = [1, 1]} : vector<8x128xf32> to vector<1x32xf32>
    %17 = vector.extract_strided_slice %10 {offsets = [6, 0], sizes = [1, 32], strides = [1, 1]} : vector<8x128xf32> to vector<1x32xf32>
    %18 = vector.extract_strided_slice %10 {offsets = [7, 0], sizes = [1, 32], strides = [1, 1]} : vector<8x128xf32> to vector<1x32xf32>
    %19 = arith.truncf %0 : vector<16x32xf32> to vector<16x32xbf16>
    %cst = arith.constant dense<0.000000e+00> : vector<16x96xf32>
    %20 = tpu.matmul %19, %2, %cst {dimension_numbers = #tpu.dot_dimension_numbers<[1], [0], [0], [1], [0, 0, 1, 1], [], []>} : vector<16x32xbf16>, vector<32x96xbf16>, vector<16x96xf32> -> vector<16x96xf32>
    %21 = vector.broadcast %11 : vector<1x96xf32> to vector<16x96xf32>
    %22 = arith.addf %20, %21 : vector<16x96xf32>
    %23 = vector.extract_strided_slice %22 {offsets = [0, 0], sizes = [16, 32], strides = [1, 1]} : vector<16x96xf32> to vector<16x32xf32>
    %24 = vector.shape_cast %23 : vector<16x32xf32> to vector<2x8x32xf32>
    %25 = vector.extract_strided_slice %22 {offsets = [0, 32], sizes = [16, 32], strides = [1, 1]} : vector<16x96xf32> to vector<16x32xf32>
    %26 = vector.shape_cast %25 : vector<16x32xf32> to vector<2x8x32xf32>
    %27 = vector.extract_strided_slice %22 {offsets = [0, 64], sizes = [16, 32], strides = [1, 1]} : vector<16x96xf32> to vector<16x32xf32>
    %28 = vector.shape_cast %27 : vector<16x32xf32> to vector<2x8x32xf32>
    %29 = vector.extract_strided_slice %24 {offsets = [0, 0, 0], sizes = [2, 8, 8], strides = [1, 1, 1]} : vector<2x8x32xf32> to vector<2x8x8xf32>
    %30 = vector.extract_strided_slice %24 {offsets = [0, 0, 8], sizes = [2, 8, 8], strides = [1, 1, 1]} : vector<2x8x32xf32> to vector<2x8x8xf32>
    %31 = vector.extract_strided_slice %24 {offsets = [0, 0, 16], sizes = [2, 8, 8], strides = [1, 1, 1]} : vector<2x8x32xf32> to vector<2x8x8xf32>
    %32 = vector.extract_strided_slice %24 {offsets = [0, 0, 24], sizes = [2, 8, 8], strides = [1, 1, 1]} : vector<2x8x32xf32> to vector<2x8x8xf32>
    %33 = tpu.concatenate %29, %30, %31, %32 in 0 : vector<2x8x8xf32>, vector<2x8x8xf32>, vector<2x8x8xf32>, vector<2x8x8xf32> -> vector<8x8x8xf32>
    %34 = arith.truncf %33 : vector<8x8x8xf32> to vector<8x8x8xbf16>
    %35 = vector.extract_strided_slice %26 {offsets = [0, 0, 0], sizes = [2, 8, 8], strides = [1, 1, 1]} : vector<2x8x32xf32> to vector<2x8x8xf32>
    %36 = vector.extract_strided_slice %26 {offsets = [0, 0, 8], sizes = [2, 8, 8], strides = [1, 1, 1]} : vector<2x8x32xf32> to vector<2x8x8xf32>
    %37 = vector.extract_strided_slice %26 {offsets = [0, 0, 16], sizes = [2, 8, 8], strides = [1, 1, 1]} : vector<2x8x32xf32> to vector<2x8x8xf32>
    %38 = vector.extract_strided_slice %26 {offsets = [0, 0, 24], sizes = [2, 8, 8], strides = [1, 1, 1]} : vector<2x8x32xf32> to vector<2x8x8xf32>
    %39 = tpu.concatenate %35, %36, %37, %38 in 0 : vector<2x8x8xf32>, vector<2x8x8xf32>, vector<2x8x8xf32>, vector<2x8x8xf32> -> vector<8x8x8xf32>
    %40 = arith.truncf %39 : vector<8x8x8xf32> to vector<8x8x8xbf16>
    %41 = vector.extract_strided_slice %28 {offsets = [0, 0, 0], sizes = [2, 8, 8], strides = [1, 1, 1]} : vector<2x8x32xf32> to vector<2x8x8xf32>
    %42 = vector.extract_strided_slice %28 {offsets = [0, 0, 8], sizes = [2, 8, 8], strides = [1, 1, 1]} : vector<2x8x32xf32> to vector<2x8x8xf32>
    %43 = vector.extract_strided_slice %28 {offsets = [0, 0, 16], sizes = [2, 8, 8], strides = [1, 1, 1]} : vector<2x8x32xf32> to vector<2x8x8xf32>
    %44 = vector.extract_strided_slice %28 {offsets = [0, 0, 24], sizes = [2, 8, 8], strides = [1, 1, 1]} : vector<2x8x32xf32> to vector<2x8x8xf32>
    %45 = tpu.concatenate %41, %42, %43, %44 in 0 : vector<2x8x8xf32>, vector<2x8x8xf32>, vector<2x8x8xf32>, vector<2x8x8xf32> -> vector<8x8x8xf32>
    %46 = arith.truncf %45 : vector<8x8x8xf32> to vector<8x8x8xbf16>
    "tpu.trace_start"() <{level = 10 : i32, message = "bqd,bkd->bqk"}> : () -> ()
    %cst_16 = arith.constant dense<0.000000e+00> : vector<8x8x8xf32>
    %47 = tpu.matmul %34, %40, %cst_16 {dimension_numbers = #tpu.dot_dimension_numbers<[2], [2], [1], [1], [0, 0, 0, 1, 1, 1], [0], [0]>} : vector<8x8x8xbf16>, vector<8x8x8xbf16>, vector<8x8x8xf32> -> vector<8x8x8xf32>
    "tpu.trace_stop"() : () -> ()
    %cst_17 = arith.constant dense<0xFF800000> : vector<8x8xf32>
    %48 = vector.multi_reduction <maximumf>, %47, %cst_17 [2] : vector<8x8x8xf32> to vector<8x8xf32>
    %49 = vector.shape_cast %48 : vector<8x8xf32> to vector<8x8x1xf32>
    %50 = vector.broadcast %49 : vector<8x8x1xf32> to vector<8x8x8xf32>
    %51 = arith.subf %47, %50 : vector<8x8x8xf32>
    %52 = math.exp %51 : vector<8x8x8xf32>
    %cst_18 = arith.constant dense<0.000000e+00> : vector<8x8xf32>
    %53 = vector.multi_reduction <add>, %52, %cst_18 [2] : vector<8x8x8xf32> to vector<8x8xf32>
    %54 = vector.shape_cast %53 : vector<8x8xf32> to vector<8x8x1xf32>
    %55 = tpu.reciprocal %54 {approx = true} : vector<8x8x1xf32> -> vector<8x8x1xf32>
    %56 = vector.broadcast %55 : vector<8x8x1xf32> to vector<8x8x8xf32>
    %57 = arith.mulf %52, %56 : vector<8x8x8xf32>
    %58 = arith.truncf %57 : vector<8x8x8xf32> to vector<8x8x8xbf16>
    "tpu.trace_start"() <{level = 10 : i32, message = "bqk,bkd->bqd"}> : () -> ()
    %cst_19 = arith.constant dense<0.000000e+00> : vector<8x8x8xf32>
    %59 = tpu.matmul %58, %46, %cst_19 {dimension_numbers = #tpu.dot_dimension_numbers<[2], [1], [1], [2], [0, 0, 0, 1, 1, 2], [0], [0]>} : vector<8x8x8xbf16>, vector<8x8x8xbf16>, vector<8x8x8xf32> -> vector<8x8x8xf32>
    "tpu.trace_stop"() : () -> ()
    %60 = vector.extract_strided_slice %59 {offsets = [0, 0, 0], sizes = [2, 8, 8], strides = [1, 1, 1]} : vector<8x8x8xf32> to vector<2x8x8xf32>
    %61 = vector.extract_strided_slice %59 {offsets = [2, 0, 0], sizes = [2, 8, 8], strides = [1, 1, 1]} : vector<8x8x8xf32> to vector<2x8x8xf32>
    %62 = vector.extract_strided_slice %59 {offsets = [4, 0, 0], sizes = [2, 8, 8], strides = [1, 1, 1]} : vector<8x8x8xf32> to vector<2x8x8xf32>
    %63 = vector.extract_strided_slice %59 {offsets = [6, 0, 0], sizes = [2, 8, 8], strides = [1, 1, 1]} : vector<8x8x8xf32> to vector<2x8x8xf32>
    %64 = tpu.concatenate %60, %61, %62, %63 in 2 : vector<2x8x8xf32>, vector<2x8x8xf32>, vector<2x8x8xf32>, vector<2x8x8xf32> -> vector<2x8x32xf32>
    %65 = vector.shape_cast %64 : vector<2x8x32xf32> to vector<16x32xf32>
    %66 = arith.truncf %65 : vector<16x32xf32> to vector<16x32xbf16>
    %cst_20 = arith.constant dense<0.000000e+00> : vector<16x32xf32>
    %67 = tpu.matmul %66, %4, %cst_20 {dimension_numbers = #tpu.dot_dimension_numbers<[1], [0], [0], [1], [0, 0, 1, 1], [], []>} : vector<16x32xbf16>, vector<32x32xbf16>, vector<16x32xf32> -> vector<16x32xf32>
    %68 = vector.broadcast %12 : vector<1x32xf32> to vector<16x32xf32>
    %69 = arith.addf %67, %68 : vector<16x32xf32>
    %70 = arith.addf %0, %69 : vector<16x32xf32>
    %cst_21 = arith.constant dense<0.000000e+00> : vector<16xf32>
    %71 = vector.multi_reduction <add>, %70, %cst_21 [1] : vector<16x32xf32> to vector<16xf32>
    %72 = vector.shape_cast %71 : vector<16xf32> to vector<16x1xf32>
    %cst_22 = arith.constant 3.200000e+01 : f32
    %73 = vector.broadcast %cst_22 : f32 to vector<16x1xf32>
    %74 = arith.divf %72, %73 : vector<16x1xf32>
    %75 = vector.broadcast %74 : vector<16x1xf32> to vector<16x32xf32>
    %76 = arith.subf %70, %75 : vector<16x32xf32>
    %77 = arith.mulf %76, %76 : vector<16x32xf32>
    %cst_23 = arith.constant dense<0.000000e+00> : vector<16xf32>
    %78 = vector.multi_reduction <add>, %77, %cst_23 [1] : vector<16x32xf32> to vector<16xf32>
    %79 = vector.shape_cast %78 : vector<16xf32> to vector<16x1xf32>
    %cst_24 = arith.constant 3.200000e+01 : f32
    %80 = vector.broadcast %cst_24 : f32 to vector<16x1xf32>
    %81 = arith.divf %79, %80 : vector<16x1xf32>
    %82 = vector.broadcast %74 : vector<16x1xf32> to vector<16x32xf32>
    %83 = arith.subf %70, %82 : vector<16x32xf32>
    %cst_25 = arith.constant 9.99999996E-13 : f32
    %84 = vector.broadcast %cst_25 : f32 to vector<16x1xf32>
    %85 = arith.addf %81, %84 : vector<16x1xf32>
    %86 = math.rsqrt %85 : vector<16x1xf32>
    %87 = vector.broadcast %86 : vector<16x1xf32> to vector<16x32xf32>
    %88 = arith.mulf %83, %87 : vector<16x32xf32>
    %89 = vector.broadcast %13 : vector<1x32xf32> to vector<16x32xf32>
    %90 = arith.mulf %88, %89 : vector<16x32xf32>
    %91 = vector.broadcast %14 : vector<1x32xf32> to vector<16x32xf32>
    %92 = arith.addf %90, %91 : vector<16x32xf32>
    %93 = arith.truncf %92 : vector<16x32xf32> to vector<16x32xbf16>
    %cst_26 = arith.constant dense<0.000000e+00> : vector<16x128xf32>
    %94 = tpu.matmul %93, %6, %cst_26 {dimension_numbers = #tpu.dot_dimension_numbers<[1], [0], [0], [1], [0, 0, 1, 1], [], []>} : vector<16x32xbf16>, vector<32x128xbf16>, vector<16x128xf32> -> vector<16x128xf32>
    %95 = vector.broadcast %15 : vector<1x128xf32> to vector<16x128xf32>
    %96 = arith.addf %94, %95 : vector<16x128xf32>
    %97 = arith.mulf %96, %96 : vector<16x128xf32>
    %98 = arith.mulf %96, %97 : vector<16x128xf32>
    %cst_27 = arith.constant 4.471500e-02 : f32
    %99 = vector.broadcast %cst_27 : f32 to vector<16x128xf32>
    %100 = arith.mulf %99, %98 : vector<16x128xf32>
    %101 = arith.addf %96, %100 : vector<16x128xf32>
    %cst_28 = arith.constant 0.797884583 : f32
    %102 = vector.broadcast %cst_28 : f32 to vector<16x128xf32>
    %103 = arith.mulf %102, %101 : vector<16x128xf32>
    %104 = math.tanh %103 : vector<16x128xf32>
    %cst_29 = arith.constant 1.000000e+00 : f32
    %105 = vector.broadcast %cst_29 : f32 to vector<16x128xf32>
    %106 = arith.addf %105, %104 : vector<16x128xf32>
    %cst_30 = arith.constant 5.000000e-01 : f32
    %107 = vector.broadcast %cst_30 : f32 to vector<16x128xf32>
    %108 = arith.mulf %107, %106 : vector<16x128xf32>
    %109 = arith.mulf %96, %108 : vector<16x128xf32>
    %110 = arith.truncf %109 : vector<16x128xf32> to vector<16x128xbf16>
    %cst_31 = arith.constant dense<0.000000e+00> : vector<16x32xf32>
    %111 = tpu.matmul %110, %8, %cst_31 {dimension_numbers = #tpu.dot_dimension_numbers<[1], [0], [0], [1], [0, 0, 1, 1], [], []>} : vector<16x128xbf16>, vector<128x32xbf16>, vector<16x32xf32> -> vector<16x32xf32>
    %112 = vector.broadcast %16 : vector<1x32xf32> to vector<16x32xf32>
    %113 = arith.addf %111, %112 : vector<16x32xf32>
    %114 = arith.addf %92, %113 : vector<16x32xf32>
    %cst_32 = arith.constant dense<0.000000e+00> : vector<16xf32>
    %115 = vector.multi_reduction <add>, %114, %cst_32 [1] : vector<16x32xf32> to vector<16xf32>
    %116 = vector.shape_cast %115 : vector<16xf32> to vector<16x1xf32>
    %cst_33 = arith.constant 3.200000e+01 : f32
    %117 = vector.broadcast %cst_33 : f32 to vector<16x1xf32>
    %118 = arith.divf %116, %117 : vector<16x1xf32>
    %119 = vector.broadcast %118 : vector<16x1xf32> to vector<16x32xf32>
    %120 = arith.subf %114, %119 : vector<16x32xf32>
    %121 = arith.mulf %120, %120 : vector<16x32xf32>
    %cst_34 = arith.constant dense<0.000000e+00> : vector<16xf32>
    %122 = vector.multi_reduction <add>, %121, %cst_34 [1] : vector<16x32xf32> to vector<16xf32>
    %123 = vector.shape_cast %122 : vector<16xf32> to vector<16x1xf32>
    %cst_35 = arith.constant 3.200000e+01 : f32
    %124 = vector.broadcast %cst_35 : f32 to vector<16x1xf32>
    %125 = arith.divf %123, %124 : vector<16x1xf32>
    %126 = vector.broadcast %118 : vector<16x1xf32> to vector<16x32xf32>
    %127 = arith.subf %114, %126 : vector<16x32xf32>
    %cst_36 = arith.constant 9.99999996E-13 : f32
    %128 = vector.broadcast %cst_36 : f32 to vector<16x1xf32>
    %129 = arith.addf %125, %128 : vector<16x1xf32>
    %130 = math.rsqrt %129 : vector<16x1xf32>
    %131 = vector.broadcast %130 : vector<16x1xf32> to vector<16x32xf32>
    %132 = arith.mulf %127, %131 : vector<16x32xf32>
    %133 = vector.broadcast %17 : vector<1x32xf32> to vector<16x32xf32>
    %134 = arith.mulf %132, %133 : vector<16x32xf32>
    %135 = vector.broadcast %18 : vector<1x32xf32> to vector<16x32xf32>
    %136 = arith.addf %134, %135 : vector<16x32xf32>
    %c1 = arith.constant 1 : index
    %c0_37 = arith.constant 0 : index
    %c0_38 = arith.constant 0 : index
    %137 = vector.load %arg1[%c1, %c0_37, %c0_38] : memref<2x32x96xbf16, #tpu.memory_space<vmem>>, vector<1x32x96xbf16>
    %138 = vector.shape_cast %137 : vector<1x32x96xbf16> to vector<32x96xbf16>
    %c1_39 = arith.constant 1 : index
    %c0_40 = arith.constant 0 : index
    %c0_41 = arith.constant 0 : index
    %139 = vector.load %arg2[%c1_39, %c0_40, %c0_41] : memref<2x32x32xbf16, #tpu.memory_space<vmem>>, vector<1x32x32xbf16>
    %140 = vector.shape_cast %139 : vector<1x32x32xbf16> to vector<32x32xbf16>
    %c1_42 = arith.constant 1 : index
    %c0_43 = arith.constant 0 : index
    %c0_44 = arith.constant 0 : index
    %141 = vector.load %arg3[%c1_42, %c0_43, %c0_44] : memref<2x32x128xbf16, #tpu.memory_space<vmem>>, vector<1x32x128xbf16>
    %142 = vector.shape_cast %141 : vector<1x32x128xbf16> to vector<32x128xbf16>
    %c1_45 = arith.constant 1 : index
    %c0_46 = arith.constant 0 : index
    %c0_47 = arith.constant 0 : index
    %143 = vector.load %arg4[%c1_45, %c0_46, %c0_47] : memref<2x128x32xbf16, #tpu.memory_space<vmem>>, vector<1x128x32xbf16>
    %144 = vector.shape_cast %143 : vector<1x128x32xbf16> to vector<128x32xbf16>
    %c1_48 = arith.constant 1 : index
    %c0_49 = arith.constant 0 : index
    %c0_50 = arith.constant 0 : index
    %145 = vector.load %arg5[%c1_48, %c0_49, %c0_50] : memref<2x8x128xf32, #tpu.memory_space<vmem>>, vector<1x8x128xf32>
    %146 = vector.shape_cast %145 : vector<1x8x128xf32> to vector<8x128xf32>
    %147 = vector.extract_strided_slice %146 {offsets = [0, 0], sizes = [1, 96], strides = [1, 1]} : vector<8x128xf32> to vector<1x96xf32>
    %148 = vector.extract_strided_slice %146 {offsets = [1, 0], sizes = [1, 32], strides = [1, 1]} : vector<8x128xf32> to vector<1x32xf32>
    %149 = vector.extract_strided_slice %146 {offsets = [2, 0], sizes = [1, 32], strides = [1, 1]} : vector<8x128xf32> to vector<1x32xf32>
    %150 = vector.extract_strided_slice %146 {offsets = [3, 0], sizes = [1, 32], strides = [1, 1]} : vector<8x128xf32> to vector<1x32xf32>
    %151 = vector.extract_strided_slice %146 {offsets = [4, 0], sizes = [1, 128], strides = [1, 1]} : vector<8x128xf32> to vector<1x128xf32>
    %152 = vector.extract_strided_slice %146 {offsets = [5, 0], sizes = [1, 32], strides = [1, 1]} : vector<8x128xf32> to vector<1x32xf32>
    %153 = vector.extract_strided_slice %146 {offsets = [6, 0], sizes = [1, 32], strides = [1, 1]} : vector<8x128xf32> to vector<1x32xf32>
    %154 = vector.extract_strided_slice %146 {offsets = [7, 0], sizes = [1, 32], strides = [1, 1]} : vector<8x128xf32> to vector<1x32xf32>
    %155 = arith.truncf %136 : vector<16x32xf32> to vector<16x32xbf16>
    %cst_51 = arith.constant dense<0.000000e+00> : vector<16x96xf32>
    %156 = tpu.matmul %155, %138, %cst_51 {dimension_numbers = #tpu.dot_dimension_numbers<[1], [0], [0], [1], [0, 0, 1, 1], [], []>} : vector<16x32xbf16>, vector<32x96xbf16>, vector<16x96xf32> -> vector<16x96xf32>
    %157 = vector.broadcast %147 : vector<1x96xf32> to vector<16x96xf32>
    %158 = arith.addf %156, %157 : vector<16x96xf32>
    %159 = vector.extract_strided_slice %158 {offsets = [0, 0], sizes = [16, 32], strides = [1, 1]} : vector<16x96xf32> to vector<16x32xf32>
    %160 = vector.shape_cast %159 : vector<16x32xf32> to vector<2x8x32xf32>
    %161 = vector.extract_strided_slice %158 {offsets = [0, 32], sizes = [16, 32], strides = [1, 1]} : vector<16x96xf32> to vector<16x32xf32>
    %162 = vector.shape_cast %161 : vector<16x32xf32> to vector<2x8x32xf32>
    %163 = vector.extract_strided_slice %158 {offsets = [0, 64], sizes = [16, 32], strides = [1, 1]} : vector<16x96xf32> to vector<16x32xf32>
    %164 = vector.shape_cast %163 : vector<16x32xf32> to vector<2x8x32xf32>
    %165 = vector.extract_strided_slice %160 {offsets = [0, 0, 0], sizes = [2, 8, 8], strides = [1, 1, 1]} : vector<2x8x32xf32> to vector<2x8x8xf32>
    %166 = vector.extract_strided_slice %160 {offsets = [0, 0, 8], sizes = [2, 8, 8], strides = [1, 1, 1]} : vector<2x8x32xf32> to vector<2x8x8xf32>
    %167 = vector.extract_strided_slice %160 {offsets = [0, 0, 16], sizes = [2, 8, 8], strides = [1, 1, 1]} : vector<2x8x32xf32> to vector<2x8x8xf32>
    %168 = vector.extract_strided_slice %160 {offsets = [0, 0, 24], sizes = [2, 8, 8], strides = [1, 1, 1]} : vector<2x8x32xf32> to vector<2x8x8xf32>
    %169 = tpu.concatenate %165, %166, %167, %168 in 0 : vector<2x8x8xf32>, vector<2x8x8xf32>, vector<2x8x8xf32>, vector<2x8x8xf32> -> vector<8x8x8xf32>
    %170 = arith.truncf %169 : vector<8x8x8xf32> to vector<8x8x8xbf16>
    %171 = vector.extract_strided_slice %162 {offsets = [0, 0, 0], sizes = [2, 8, 8], strides = [1, 1, 1]} : vector<2x8x32xf32> to vector<2x8x8xf32>
    %172 = vector.extract_strided_slice %162 {offsets = [0, 0, 8], sizes = [2, 8, 8], strides = [1, 1, 1]} : vector<2x8x32xf32> to vector<2x8x8xf32>
    %173 = vector.extract_strided_slice %162 {offsets = [0, 0, 16], sizes = [2, 8, 8], strides = [1, 1, 1]} : vector<2x8x32xf32> to vector<2x8x8xf32>
    %174 = vector.extract_strided_slice %162 {offsets = [0, 0, 24], sizes = [2, 8, 8], strides = [1, 1, 1]} : vector<2x8x32xf32> to vector<2x8x8xf32>
    %175 = tpu.concatenate %171, %172, %173, %174 in 0 : vector<2x8x8xf32>, vector<2x8x8xf32>, vector<2x8x8xf32>, vector<2x8x8xf32> -> vector<8x8x8xf32>
    %176 = arith.truncf %175 : vector<8x8x8xf32> to vector<8x8x8xbf16>
    %177 = vector.extract_strided_slice %164 {offsets = [0, 0, 0], sizes = [2, 8, 8], strides = [1, 1, 1]} : vector<2x8x32xf32> to vector<2x8x8xf32>
    %178 = vector.extract_strided_slice %164 {offsets = [0, 0, 8], sizes = [2, 8, 8], strides = [1, 1, 1]} : vector<2x8x32xf32> to vector<2x8x8xf32>
    %179 = vector.extract_strided_slice %164 {offsets = [0, 0, 16], sizes = [2, 8, 8], strides = [1, 1, 1]} : vector<2x8x32xf32> to vector<2x8x8xf32>
    %180 = vector.extract_strided_slice %164 {offsets = [0, 0, 24], sizes = [2, 8, 8], strides = [1, 1, 1]} : vector<2x8x32xf32> to vector<2x8x8xf32>
    %181 = tpu.concatenate %177, %178, %179, %180 in 0 : vector<2x8x8xf32>, vector<2x8x8xf32>, vector<2x8x8xf32>, vector<2x8x8xf32> -> vector<8x8x8xf32>
    %182 = arith.truncf %181 : vector<8x8x8xf32> to vector<8x8x8xbf16>
    "tpu.trace_start"() <{level = 10 : i32, message = "bqd,bkd->bqk"}> : () -> ()
    %cst_52 = arith.constant dense<0.000000e+00> : vector<8x8x8xf32>
    %183 = tpu.matmul %170, %176, %cst_52 {dimension_numbers = #tpu.dot_dimension_numbers<[2], [2], [1], [1], [0, 0, 0, 1, 1, 1], [0], [0]>} : vector<8x8x8xbf16>, vector<8x8x8xbf16>, vector<8x8x8xf32> -> vector<8x8x8xf32>
    "tpu.trace_stop"() : () -> ()
    %cst_53 = arith.constant dense<0xFF800000> : vector<8x8xf32>
    %184 = vector.multi_reduction <maximumf>, %183, %cst_53 [2] : vector<8x8x8xf32> to vector<8x8xf32>
    %185 = vector.shape_cast %184 : vector<8x8xf32> to vector<8x8x1xf32>
    %186 = vector.broadcast %185 : vector<8x8x1xf32> to vector<8x8x8xf32>
    %187 = arith.subf %183, %186 : vector<8x8x8xf32>
    %188 = math.exp %187 : vector<8x8x8xf32>
    %cst_54 = arith.constant dense<0.000000e+00> : vector<8x8xf32>
    %189 = vector.multi_reduction <add>, %188, %cst_54 [2] : vector<8x8x8xf32> to vector<8x8xf32>
    %190 = vector.shape_cast %189 : vector<8x8xf32> to vector<8x8x1xf32>
    %191 = tpu.reciprocal %190 {approx = true} : vector<8x8x1xf32> -> vector<8x8x1xf32>
    %192 = vector.broadcast %191 : vector<8x8x1xf32> to vector<8x8x8xf32>
    %193 = arith.mulf %188, %192 : vector<8x8x8xf32>
    %194 = arith.truncf %193 : vector<8x8x8xf32> to vector<8x8x8xbf16>
    "tpu.trace_start"() <{level = 10 : i32, message = "bqk,bkd->bqd"}> : () -> ()
    %cst_55 = arith.constant dense<0.000000e+00> : vector<8x8x8xf32>
    %195 = tpu.matmul %194, %182, %cst_55 {dimension_numbers = #tpu.dot_dimension_numbers<[2], [1], [1], [2], [0, 0, 0, 1, 1, 2], [0], [0]>} : vector<8x8x8xbf16>, vector<8x8x8xbf16>, vector<8x8x8xf32> -> vector<8x8x8xf32>
    "tpu.trace_stop"() : () -> ()
    %196 = vector.extract_strided_slice %195 {offsets = [0, 0, 0], sizes = [2, 8, 8], strides = [1, 1, 1]} : vector<8x8x8xf32> to vector<2x8x8xf32>
    %197 = vector.extract_strided_slice %195 {offsets = [2, 0, 0], sizes = [2, 8, 8], strides = [1, 1, 1]} : vector<8x8x8xf32> to vector<2x8x8xf32>
    %198 = vector.extract_strided_slice %195 {offsets = [4, 0, 0], sizes = [2, 8, 8], strides = [1, 1, 1]} : vector<8x8x8xf32> to vector<2x8x8xf32>
    %199 = vector.extract_strided_slice %195 {offsets = [6, 0, 0], sizes = [2, 8, 8], strides = [1, 1, 1]} : vector<8x8x8xf32> to vector<2x8x8xf32>
    %200 = tpu.concatenate %196, %197, %198, %199 in 2 : vector<2x8x8xf32>, vector<2x8x8xf32>, vector<2x8x8xf32>, vector<2x8x8xf32> -> vector<2x8x32xf32>
    %201 = vector.shape_cast %200 : vector<2x8x32xf32> to vector<16x32xf32>
    %202 = arith.truncf %201 : vector<16x32xf32> to vector<16x32xbf16>
    %cst_56 = arith.constant dense<0.000000e+00> : vector<16x32xf32>
    %203 = tpu.matmul %202, %140, %cst_56 {dimension_numbers = #tpu.dot_dimension_numbers<[1], [0], [0], [1], [0, 0, 1, 1], [], []>} : vector<16x32xbf16>, vector<32x32xbf16>, vector<16x32xf32> -> vector<16x32xf32>
    %204 = vector.broadcast %148 : vector<1x32xf32> to vector<16x32xf32>
    %205 = arith.addf %203, %204 : vector<16x32xf32>
    %206 = arith.addf %136, %205 : vector<16x32xf32>
    %cst_57 = arith.constant dense<0.000000e+00> : vector<16xf32>
    %207 = vector.multi_reduction <add>, %206, %cst_57 [1] : vector<16x32xf32> to vector<16xf32>
    %208 = vector.shape_cast %207 : vector<16xf32> to vector<16x1xf32>
    %cst_58 = arith.constant 3.200000e+01 : f32
    %209 = vector.broadcast %cst_58 : f32 to vector<16x1xf32>
    %210 = arith.divf %208, %209 : vector<16x1xf32>
    %211 = vector.broadcast %210 : vector<16x1xf32> to vector<16x32xf32>
    %212 = arith.subf %206, %211 : vector<16x32xf32>
    %213 = arith.mulf %212, %212 : vector<16x32xf32>
    %cst_59 = arith.constant dense<0.000000e+00> : vector<16xf32>
    %214 = vector.multi_reduction <add>, %213, %cst_59 [1] : vector<16x32xf32> to vector<16xf32>
    %215 = vector.shape_cast %214 : vector<16xf32> to vector<16x1xf32>
    %cst_60 = arith.constant 3.200000e+01 : f32
    %216 = vector.broadcast %cst_60 : f32 to vector<16x1xf32>
    %217 = arith.divf %215, %216 : vector<16x1xf32>
    %218 = vector.broadcast %210 : vector<16x1xf32> to vector<16x32xf32>
    %219 = arith.subf %206, %218 : vector<16x32xf32>
    %cst_61 = arith.constant 9.99999996E-13 : f32
    %220 = vector.broadcast %cst_61 : f32 to vector<16x1xf32>
    %221 = arith.addf %217, %220 : vector<16x1xf32>
    %222 = math.rsqrt %221 : vector<16x1xf32>
    %223 = vector.broadcast %222 : vector<16x1xf32> to vector<16x32xf32>
    %224 = arith.mulf %219, %223 : vector<16x32xf32>
    %225 = vector.broadcast %149 : vector<1x32xf32> to vector<16x32xf32>
    %226 = arith.mulf %224, %225 : vector<16x32xf32>
    %227 = vector.broadcast %150 : vector<1x32xf32> to vector<16x32xf32>
    %228 = arith.addf %226, %227 : vector<16x32xf32>
    %229 = arith.truncf %228 : vector<16x32xf32> to vector<16x32xbf16>
    %cst_62 = arith.constant dense<0.000000e+00> : vector<16x128xf32>
    %230 = tpu.matmul %229, %142, %cst_62 {dimension_numbers = #tpu.dot_dimension_numbers<[1], [0], [0], [1], [0, 0, 1, 1], [], []>} : vector<16x32xbf16>, vector<32x128xbf16>, vector<16x128xf32> -> vector<16x128xf32>
    %231 = vector.broadcast %151 : vector<1x128xf32> to vector<16x128xf32>
    %232 = arith.addf %230, %231 : vector<16x128xf32>
    %233 = arith.mulf %232, %232 : vector<16x128xf32>
    %234 = arith.mulf %232, %233 : vector<16x128xf32>
    %cst_63 = arith.constant 4.471500e-02 : f32
    %235 = vector.broadcast %cst_63 : f32 to vector<16x128xf32>
    %236 = arith.mulf %235, %234 : vector<16x128xf32>
    %237 = arith.addf %232, %236 : vector<16x128xf32>
    %cst_64 = arith.constant 0.797884583 : f32
    %238 = vector.broadcast %cst_64 : f32 to vector<16x128xf32>
    %239 = arith.mulf %238, %237 : vector<16x128xf32>
    %240 = math.tanh %239 : vector<16x128xf32>
    %cst_65 = arith.constant 1.000000e+00 : f32
    %241 = vector.broadcast %cst_65 : f32 to vector<16x128xf32>
    %242 = arith.addf %241, %240 : vector<16x128xf32>
    %cst_66 = arith.constant 5.000000e-01 : f32
    %243 = vector.broadcast %cst_66 : f32 to vector<16x128xf32>
    %244 = arith.mulf %243, %242 : vector<16x128xf32>
    %245 = arith.mulf %232, %244 : vector<16x128xf32>
    %246 = arith.truncf %245 : vector<16x128xf32> to vector<16x128xbf16>
    %cst_67 = arith.constant dense<0.000000e+00> : vector<16x32xf32>
    %247 = tpu.matmul %246, %144, %cst_67 {dimension_numbers = #tpu.dot_dimension_numbers<[1], [0], [0], [1], [0, 0, 1, 1], [], []>} : vector<16x128xbf16>, vector<128x32xbf16>, vector<16x32xf32> -> vector<16x32xf32>
    %248 = vector.broadcast %152 : vector<1x32xf32> to vector<16x32xf32>
    %249 = arith.addf %247, %248 : vector<16x32xf32>
    %250 = arith.addf %228, %249 : vector<16x32xf32>
    %cst_68 = arith.constant dense<0.000000e+00> : vector<16xf32>
    %251 = vector.multi_reduction <add>, %250, %cst_68 [1] : vector<16x32xf32> to vector<16xf32>
    %252 = vector.shape_cast %251 : vector<16xf32> to vector<16x1xf32>
    %cst_69 = arith.constant 3.200000e+01 : f32
    %253 = vector.broadcast %cst_69 : f32 to vector<16x1xf32>
    %254 = arith.divf %252, %253 : vector<16x1xf32>
    %255 = vector.broadcast %254 : vector<16x1xf32> to vector<16x32xf32>
    %256 = arith.subf %250, %255 : vector<16x32xf32>
    %257 = arith.mulf %256, %256 : vector<16x32xf32>
    %cst_70 = arith.constant dense<0.000000e+00> : vector<16xf32>
    %258 = vector.multi_reduction <add>, %257, %cst_70 [1] : vector<16x32xf32> to vector<16xf32>
    %259 = vector.shape_cast %258 : vector<16xf32> to vector<16x1xf32>
    %cst_71 = arith.constant 3.200000e+01 : f32
    %260 = vector.broadcast %cst_71 : f32 to vector<16x1xf32>
    %261 = arith.divf %259, %260 : vector<16x1xf32>
    %262 = vector.broadcast %254 : vector<16x1xf32> to vector<16x32xf32>
    %263 = arith.subf %250, %262 : vector<16x32xf32>
    %cst_72 = arith.constant 9.99999996E-13 : f32
    %264 = vector.broadcast %cst_72 : f32 to vector<16x1xf32>
    %265 = arith.addf %261, %264 : vector<16x1xf32>
    %266 = math.rsqrt %265 : vector<16x1xf32>
    %267 = vector.broadcast %266 : vector<16x1xf32> to vector<16x32xf32>
    %268 = arith.mulf %263, %267 : vector<16x32xf32>
    %269 = vector.broadcast %153 : vector<1x32xf32> to vector<16x32xf32>
    %270 = arith.mulf %268, %269 : vector<16x32xf32>
    %271 = vector.broadcast %154 : vector<1x32xf32> to vector<16x32xf32>
    %272 = arith.addf %270, %271 : vector<16x32xf32>
    %c0_73 = arith.constant 0 : index
    %c0_74 = arith.constant 0 : index
    %273 = vector.load %arg6[%c0_73, %c0_74] : memref<16x32xf32, #tpu.memory_space<vmem>>, vector<16x32xf32>
    tpu.vector_store %arg6[%c0_73, %c0_74], %272 {strides = array<i32>} : memref<16x32xf32, #tpu.memory_space<vmem>>, vector<16x32xf32>,
    return
  }
}

</mosaic_0001>

<bundles_post_ra>
// kernel: dgrn_encoder_forward.1
= control target key start
LH: loop header
LB: loop body
LE: loop exit
PB: predicated region body
PF: predicated region fallthrough
CT: control target
= control target key end

     0   :  { %s2549_s0 = inlined_call_operand.vmem [shape: f32[16,32], index: 0, kind: input, shape index: {}]   ;;  %s2550_s1 = inlined_call_operand.vmem [shape: bf16[2,32,96], index: 1, kind: input, shape index: {}]   ;;  %s2551_s2 = inlined_call_operand.vmem [shape: bf16[2,32,32], index: 2, kind: input, shape index: {}]   ;;  %s2552_s3 = inlined_call_operand.vmem [shape: bf16[2,32,128], index: 3, kind: input, shape index: {}]   ;;  %s2553_s4 = inlined_call_operand.vmem [shape: bf16[2,128,32], index: 4, kind: input, shape index: {}]   ;;  %s2554_s5 = inlined_call_operand.vmem [shape: f32[2,8,128], index: 5, kind: input, shape index: {}]   ;;  %s2555_s6 = inlined_call_operand.hbm [shape: f32[16,32], index: 6, kind: output, shape index: {}]  }
   0x1   :  { %v1888_v0 = vld [vmem:[%s2550_s1 + $0x8] sm:$0xff] }
   0x2   :  { %11 = vsyncpa [#allocation3], 0  ;;  %80 = vmatpush.bf16.msra.mxu1 %v1888_v0  ;;  %v1887_v1 = vld [vmem:[%s2550_s1] sm:$0xff]  ;;  %v2147_v3 = vld [vmem:[%s2549_s0 + $0x8] sm:$0xff]  ;;  %vm70_vm0 = vcmask 261120   ;;  %s2087_s7 = smov 112  }
   0x3   :  { %v2142_v2 = vld [vmem:[%s2549_s0] sm:$0xff]  ;;  %s2088_s0 = smov 120   ;;  %s2089_s8 = smov 104   ;;  %vm121_vm1 = vcmask 64512   ;;  %vm410_vm2 = vcmask 1043456   ;;  %vm600_vm3 = vcmask 130048  }
   0x4   :  { %v56_v4 = vpack.c.bf16 %v2147_v3, %v2142_v2  ;;  %v2155_v5 = vld [vmem:[%s2554_s5] sm:$0xff]  ;;  %s2090_s9 = smov 96   ;;  %s2091_s10 = smov 64   ;;  %vm603_vm4 = vcmask 195584  }
   0x5   :  { %v57_v6 = vperm.slane %v2155_v5, 0  ;;  %s2092_s11 = smov 8   ;;  %s2093_s12 = smov 16  }
   0x6   :  { %81 = vmatpush.bf16.msra.mxu1 %v1887_v1  ;;  %s2094_s13 = smov 24   ;;  %s1696_s25 = sshll.u32 %s2555_s6, 4  ;;  %s1697_s25 = int_to_ptr.hbm [resolvable:$true] %s1696_s25 }
   0x9   :  { %1716 = vmatmul.msk.bf16.vlgmr.msra.gmra.mxu1 %vm70_vm0, %v56_v4 }
  0x86   :  { %v83_v7 = vpop.f32.mrf.mxu1 }
  0x87   :  { %v84_v8 = vadd.f32 %v83_v7, %v57_v6 }
  0x89   :  { %96 = vrot.lane.b32.xlu2 %v84_v8, %s2087_s7  ;;  %90 = vrot.lane.b32.xlu0 %v84_v8, %s2088_s0  ;;  %v108_v11 = vpack.c.bf16 %v84_v8, %v84_v8 }
  0x8b   :  { %v117_v13 = vunpack.c.l.b16 %v108_v11 }
  0x8d   :  { %v118_v15 = vpack.c.b16 %v117_v13, %v117_v13 }
  0x8e   :  { %v85_v9 = vpop.f32.mrf.mxu1 }
  0x8f   :  { %v86_v10 = vadd.f32 %v85_v9, %v57_v6 }
  0x91   :  { %98 = vrot.lane.b32.xlu1 %v86_v10, %s2087_s7  ;;  %104 = vrot.lane.b32.xlu2 %v86_v10, %s2089_s8  ;;  %v109_v12 = vpack.c.bf16 %v86_v10, %v86_v10 }
  0x92   :  { %92 = vrot.lane.b32.xlu0 %v86_v10, %s2088_s0 }
  0x93   :  { %v142_v14 = vunpack.c.l.b16 %v109_v12 }
  0x95   :  { %v143_v16 = vpack.c.b16 %v142_v14, %v142_v14 }
  0x99   :  { %102 = vrot.lane.b32.xlu1 %v84_v8, %s2089_s8  ;;  %119 = vrot.lane.b32.xlu2 %v118_v15, %s2090_s9 }
  0x9a   :  { %144 = vrot.lane.b32.xlu0 %v143_v16, %s2090_s9 }
  0xe3   :  { %v97_v17 = vpop.permute.xlu2 %96 }
  0xe4   :  { %v112_v33 = vpack.c.bf16 %v97_v17, %v97_v17 }
  0xe6   :  { %v214_v39 = vunpack.c.l.b16 %v112_v33 }
  0xe8   :  { %v2182_v44 = vpack.c.b16 %v214_v39, %v214_v39 }
  0xeb   :  { %v105_v18 = vpop.permute.xlu2 %104 }
  0xec   :  { %v2169_v31 = vpack.c.bf16 %v105_v18, %v105_v18 }
  0xee   :  { %v286_v36 = vunpack.c.l.b16 %v2169_v31 }
  0xf0   :  { %v2178_v42 = vpack.c.b16 %v286_v36, %v286_v36 }
  0xf3   :  { %v120_v19 = vpop.permute.xlu2 %119 }
  0xf4   :  { %v126_v20 = vsel %vm121_vm1, %v120_v19, 0 }
  0xf5   :  { %135 = vmatpush.bf16.xpose.msrb.mxu1 %v126_v20 }
  0xfb   :  { %v91_v21 = vpop.permute.xlu0 %90 }
  0xfc   :  { %v110_v22 = vpack.c.bf16 %v91_v21, %v91_v21  ;;  %1717 = vmatmul.msk.bf16.vlgmr.msrb.gmra.mxu1 %vm121_vm1, %v108_v11 }
  0xfe   :  { %v166_v23 = vunpack.c.l.b16 %v110_v22 }
 0x100   :  { %v167_v24 = vpack.c.b16 %v166_v23, %v166_v23 }
 0x102   :  { %168 = vrot.lane.b32.xlu1 %v167_v24, %s2090_s9 }
 0x103   :  { %v99_v25 = vpop.permute.xlu1 %98 }
 0x104   :  { %v113_v26 = vpack.c.bf16 %v99_v25, %v99_v25  ;;  %v93_v27 = vpop.permute.xlu0 %92 }
 0x105   :  { %v111_v28 = vpack.c.bf16 %v93_v27, %v93_v27 }
 0x106   :  { %v238_v29 = vunpack.c.l.b16 %v113_v26 }
 0x107   :  { %v190_v30 = vunpack.c.l.b16 %v111_v28 }
 0x108   :  { %v2171_v32 = vpack.c.b16 %v238_v29, %v238_v29 }
 0x109   :  { %v191_v34 = vpack.c.b16 %v190_v30, %v190_v30 }
 0x10a   :  { %240 = vrot.lane.b32.xlu1 %v2171_v32, %s2090_s9 }
 0x10b   :  { %192 = vrot.lane.b32.xlu0 %v191_v34, %s2090_s9  ;;  %v103_v35 = vpop.permute.xlu1 %102 }
 0x10c   :  { %v114_v37 = vpack.c.bf16 %v103_v35, %v103_v35  ;;  %v145_v38 = vpop.permute.xlu0 %144 }
 0x10d   :  { %v150_v40 = vsel %vm121_vm1, %v145_v38, 0 }
 0x10e   :  { %v262_v41 = vunpack.c.l.b16 %v114_v37  ;;  %159 = vmatpush.bf16.xpose.msra.mxu2 %v150_v40 }
 0x110   :  { %v2180_v43 = vpack.c.b16 %v262_v41, %v262_v41 }
 0x112   :  { %288 = vrot.lane.b32.xlu1 %v2178_v42, %s2090_s9  ;;  %264 = vrot.lane.b32.xlu2 %v2180_v43, %s2090_s9 }
 0x113   :  { %216 = vrot.lane.b32.xlu0 %v2182_v44, %s2090_s9 }
 0x115   :  { %1718 = vmatmul.msk.bf16.vlgmr.msra.gmra.mxu2 %vm121_vm1, %v109_v12 }
 0x11a   :  { %427 = vrot.lane.b32.xlu1 %v143_v16, %s2091_s10  ;;  %448 = vrot.lane.b32.xlu2 %v167_v24, %s2091_s10 }
 0x11b   :  { %405 = vrot.lane.b32.xlu0 %v118_v15, %s2091_s10 }
 0x16c   :  { %v265_v45 = vpop.permute.xlu2 %264 }
 0x16d   :  { %v270_v48 = vsel %vm121_vm1, %v265_v45, 0 }
 0x174   :  { %v169_v46 = vpop.permute.xlu1 %168  ;;  %v449_v50 = vpop.permute.xlu2 %448 }
 0x175   :  { %v174_v47 = vsel %vm121_vm1, %v169_v46, 0  ;;  %v454_v53 = vsel %vm410_vm2, %v449_v50, 0 }
 0x176   :  { %183 = vmatpush.bf16.xpose.msra.mxu3 %v174_v47 }
 0x179   :  { %v137_v49 = vpop.f32.mrf.mxu1 }
 0x17a   :  { %v309_v51 = vsel %vm121_vm1, %v137_v49, -inf }
 0x17b   :  { %310 = vmax.xlane.f32.xlu1 %v309_v51 }
 0x17c   :  { %v241_v52 = vpop.permute.xlu1 %240 }
 0x17d   :  { %v193_v54 = vpop.permute.xlu0 %192  ;;  %1719 = vmatmul.msk.bf16.vlgmr.msra.gmra.mxu3 %vm121_vm1, %v110_v22  ;;  %v246_v55 = vsel %vm121_vm1, %v241_v52, 0 }
 0x17e   :  { %279 = vmatpush.bf16.xpose.msrb.mxu3 %v270_v48  ;;  %v198_v56 = vsel %vm121_vm1, %v193_v54, 0  ;;  %255 = vmatpush.bf16.xpose.msrb.mxu2 %v246_v55 }
 0x17f   :  { %207 = vmatpush.bf16.xpose.msra.mxu0 %v198_v56 }
 0x181   :  { %v139_v57 = vpop.f32.mrf.mxu1 }
 0x184   :  { %v289_v58 = vpop.permute.xlu1 %288 }
 0x185   :  { %v217_v59 = vpop.permute.xlu0 %216  ;;  %1722 = vmatmul.msk.bf16.vlgmr.msrb.gmra.mxu2 %vm121_vm1, %v113_v26  ;;  %v294_v60 = vsel %vm121_vm1, %v289_v58, 0 }
 0x186   :  { %463 = vmatpush.bf16.msra.mxu3 %v454_v53  ;;  %v222_v61 = vsel %vm121_vm1, %v217_v59, 0  ;;  %1720 = vmatmul.msk.bf16.vlgmr.msra.gmra.mxu0 %vm121_vm1, %v111_v28 }
 0x187   :  { %231 = vmatpush.bf16.xpose.msra.mxu1 %v222_v61  ;;  %303 = vmatpush.bf16.xpose.msrb.mxu0 %v294_v60 }
 0x18c   :  { %v428_v62 = vpop.permute.xlu1 %427 }
 0x18d   :  { %v433_v63 = vsel %vm410_vm2, %v428_v62, 0  ;;  %v406_v0 = vpop.permute.xlu0 %405  ;;  %1723 = vmatmul.msk.bf16.vlgmr.msrb.gmra.mxu3 %vm121_vm1, %v114_v37 }
 0x18e   :  { %v412_v1 = vsel %vm410_vm2, %v406_v0, 0  ;;  %1721 = vmatmul.msk.bf16.vlgmr.msra.gmra.mxu1 %vm121_vm1, %v112_v33  ;;  %442 = vmatpush.bf16.msra.mxu2 %v433_v63 }
 0x18f   :  { %421 = vmatpush.bf16.msrb.mxu1 %v412_v1 }
 0x194   :  { %469 = vrot.lane.b32.xlu1 %v191_v34, %s2091_s10 }
 0x196   :  { %1724 = vmatmul.msk.bf16.vlgmr.msrb.gmra.mxu0 %vm121_vm1, %v2169_v31 }
 0x198   :  { %v161_v4 = vpop.f32.mrf.mxu2 }
 0x199   :  { %v312_v6 = vsel %vm121_vm1, %v161_v4, -inf }
 0x19a   :  { %313 = vmax.xlane.f32.xlu2 %v312_v6 }
 0x1a0   :  { %v163_v7 = vpop.f32.mrf.mxu2 }
 0x1ee   :  { %v311_v8 = vpop.xlane.xlu1 %310 }
 0x1ef   :  { %v333_v9 = vsub.f32 %v137_v49, %v311_v8 }
 0x1f1   :  { %v341_v10 = vmul.f32 1.442695, %v333_v9 }
 0x1f3   :  { %1971 = vpow2.f32 %v341_v10 }
 0x1f9   :  { %v1972_v19 = vpop.eup %1971 }
 0x1fa   :  { %v357_v22 = vsel %vm121_vm1, %v1972_v19, 0.0 }
 0x200   :  { %v185_v11 = vpop.f32.mrf.mxu3 }
 0x201   :  { %v315_v12 = vsel %vm121_vm1, %v185_v11, -inf }
 0x202   :  { %316 = vmax.xlane.f32.xlu0 %v315_v12 }
 0x203   :  { %v209_v13 = vpop.f32.mrf.mxu0 }
 0x204   :  { %v318_v14 = vsel %vm121_vm1, %v209_v13, -inf }
 0x205   :  { %319 = vmax.xlane.f32.xlu2 %v318_v14 }
 0x206   :  { %v470_v15 = vpop.permute.xlu1 %469 }
 0x207   :  { %v475_v16 = vsel %vm410_vm2, %v470_v15, 0 }
 0x208   :  { %v187_v17 = vpop.f32.mrf.mxu3  ;;  %v257_v18 = vpop.f32.mrf.mxu2  ;;  %484 = vmatpush.bf16.msra.mxu0 %v475_v16 }
 0x209   :  { %v324_v33 = vsel %vm121_vm1, %v257_v18, -inf }
 0x20b   :  { %v211_v20 = vpop.f32.mrf.mxu0  ;;  %v233_v21 = vpop.f32.mrf.mxu1 }
 0x20c   :  { %v321_v23 = vsel %vm121_vm1, %v233_v21, -inf }
 0x20d   :  { %358 = vadd.xlane.f32.xlu2 %v357_v22  ;;  %322 = vmax.xlane.f32.xlu1 %v321_v23  ;;  %v314_v24 = vpop.xlane.xlu2 %313 }
 0x20e   :  { %v334_v25 = vsub.f32 %v161_v4, %v314_v24 }
 0x210   :  { %v343_v26 = vmul.f32 1.442695, %v334_v25  ;;  %v259_v27 = vpop.f32.mrf.mxu2  ;;  %v281_v28 = vpop.f32.mrf.mxu3 }
 0x211   :  { %v327_v29 = vsel %vm121_vm1, %v281_v28, -inf }
 0x212   :  { %1973 = vpow2.f32 %v343_v26  ;;  %328 = vmax.xlane.f32.xlu0 %v327_v29 }
 0x213   :  { %v235_v30 = vpop.f32.mrf.mxu1  ;;  %v305_v31 = vpop.f32.mrf.mxu0 }
 0x214   :  { %v330_v38 = vsel %vm121_vm1, %v305_v31, -inf }
 0x215   :  { %325 = vmax.xlane.f32.xlu2 %v324_v33 }
 0x218   :  { %v1974_v34 = vpop.eup %1973  ;;  %v283_v35 = vpop.f32.mrf.mxu3 }
 0x219   :  { %v360_v36 = vsel %vm121_vm1, %v1974_v34, 0.0 }
 0x21a   :  { %361 = vadd.xlane.f32.xlu0 %v360_v36 }
 0x21b   :  { %v307_v37 = vpop.f32.mrf.mxu0 }
 0x21d   :  { %331 = vmax.xlane.f32.xlu2 %v330_v38 }
 0x235   :  { %511 = vrot.lane.b32.xlu2 %v2171_v32, %s2091_s10 }
 0x275   :  { %v317_v45 = vpop.xlane.xlu0 %316 }
 0x276   :  { %v335_v50 = vsub.f32 %v185_v11, %v317_v45 }
 0x278   :  { %v320_v39 = vpop.xlane.xlu2 %319  ;;  %v345_v32 = vmul.f32 1.442695, %v335_v50 }
 0x279   :  { %v336_v40 = vsub.f32 %v209_v13, %v320_v39 }
 0x27b   :  { %v347_v41 = vmul.f32 1.442695, %v336_v40 }
 0x27d   :  { %1975 = vpow2.f32 %v347_v41 }
 0x280   :  { %v323_v46 = vpop.xlane.xlu1 %322  ;;  %v359_v47 = vpop.xlane.xlu2 %358 }
 0x281   :  { %v337_v48 = vsub.f32 %v233_v21, %v323_v46  ;;  %1977 = vrcp.f32 %v359_v47 }
 0x283   :  { %v1976_v49 = vpop.eup %1975  ;;  %v349_v51 = vmul.f32 1.442695, %v337_v48 }
 0x284   :  { %v366_v52 = vsel %vm121_vm1, %v1976_v49, 0.0 }
 0x285   :  { %1979 = vpow2.f32 %v349_v51  ;;  %367 = vadd.xlane.f32.xlu0 %v366_v52  ;;  %v329_v53 = vpop.xlane.xlu0 %328 }
 0x286   :  { %v339_v54 = vsub.f32 %v281_v28, %v329_v53 }
 0x287   :  { %v1978_v55 = vpop.eup %1977 }
 0x288   :  { %v389_v56 = vmul.f32 %v1978_v55, %v1972_v19  ;;  %v353_v57 = vmul.f32 1.442695, %v339_v54  ;;  %v326_v58 = vpop.xlane.xlu2 %325 }
 0x289   :  { %v338_v59 = vsub.f32 %v257_v18, %v326_v58 }
 0x28a   :  { %v397_v60 = vpack.c.bf16 %v389_v56, %v389_v56  ;;  %1981 = vpow2.f32 %v353_v57 }
 0x28b   :  { %v2225_v61 = vpop.eup %1979  ;;  %1983 = vpow2.f32 %v345_v32  ;;  %v351_v62 = vmul.f32 1.442695, %v338_v59 }
 0x28c   :  { %1725 = vmatmul.msk.bf16.vlgmr.msrb.gmra.mxu1 %vm121_vm1, %v397_v60  ;;  %v369_v63 = vsel %vm121_vm1, %v2225_v61, 0.0 }
 0x28d   :  { %1985 = vpow2.f32 %v351_v62  ;;  %370 = vadd.xlane.f32.xlu1 %v369_v63  ;;  %v362_v0 = vpop.xlane.xlu0 %361 }
 0x28e   :  { %1987 = vrcp.f32 %v362_v0 }
 0x290   :  { %v1982_v1 = vpop.eup %1981  ;;  %v332_v4 = vpop.xlane.xlu2 %331 }
 0x291   :  { %v1984_v6 = vpop.eup %1983  ;;  %v340_v7 = vsub.f32 %v305_v31, %v332_v4  ;;  %v375_v8 = vsel %vm121_vm1, %v1982_v1, 0.0 }
 0x292   :  { %376 = vadd.xlane.f32.xlu2 %v375_v8  ;;  %v363_v12 = vsel %vm121_vm1, %v1984_v6, 0.0  ;;  %v1890_v8 = vld [vmem:[%s2551_s2 + $0x8] sm:$0xff] }
 0x293   :  { %v1986_v9 = vpop.eup %1985  ;;  %v355_v10 = vmul.f32 1.442695, %v340_v7 }
 0x294   :  { %v1988_v11 = vpop.eup %1987  ;;  %v372_v13 = vsel %vm121_vm1, %v1986_v9, 0.0 }
 0x295   :  { %v390_v14 = vmul.f32 %v1988_v11, %v1974_v34  ;;  %1989 = vpow2.f32 %v355_v10  ;;  %364 = vadd.xlane.f32.xlu1 %v363_v12  ;;  %373 = vadd.xlane.f32.xlu0 %v372_v13 }
 0x297   :  { %v398_v15 = vpack.c.bf16 %v390_v14, %v390_v14 }
 0x298   :  { %v512_v16 = vpop.permute.xlu2 %511 }
 0x299   :  { %v517_v17 = vsel %vm410_vm2, %v512_v16, 0  ;;  %1726 = vmatmul.msk.bf16.vlgmr.msra.gmra.mxu2 %vm121_vm1, %v398_v15 }
 0x29a   :  { %526 = vmatpush.bf16.msrb.mxu2 %v517_v17 }
 0x29b   :  { %v1990_v18 = vpop.eup %1989 }
 0x29c   :  { %v378_v19 = vsel %vm121_vm1, %v1990_v18, 0.0 }
 0x29d   :  { %379 = vadd.xlane.f32.xlu0 %v378_v19 }
 0x2aa   :  { %553 = vrot.lane.b32.xlu2 %v2178_v42, %s2091_s10 }
 0x2ae   :  { %532 = vrot.lane.b32.xlu1 %v2180_v43, %s2091_s10 }
 0x2b1   :  { %490 = vrot.lane.b32.xlu0 %v2182_v44, %s2091_s10 }
 0x2f8   :  { %v368_v20 = vpop.xlane.xlu0 %367 }
 0x2f9   :  { %1991 = vrcp.f32 %v368_v20 }
 0x2ff   :  { %v1992_v21 = vpop.eup %1991 }
 0x300   :  { %v392_v22 = vmul.f32 %v1992_v21, %v1976_v49  ;;  %v371_v23 = vpop.xlane.xlu1 %370 }
 0x302   :  { %v400_v24 = vpack.c.bf16 %v392_v22, %v392_v22 }
 0x304   :  { %1728 = vmatmul.msk.bf16.vlgmr.msra.gmra.mxu0 %vm121_vm1, %v400_v24 }
 0x305   :  { %v377_v25 = vpop.xlane.xlu2 %376 }
 0x308   :  { %v365_v26 = vpop.xlane.xlu1 %364  ;;  %v374_v27 = vpop.xlane.xlu0 %373 }
 0x309   :  { %1993 = vrcp.f32 %v365_v26  ;;  %v2243_v28 = vpop.f32.mrf.mxu1  ;;  %v607_v26 = vperm.slane %v2155_v5, 1 }
 0x30a   :  { %1995 = vrcp.f32 %v374_v27 }
 0x30d   :  { %v554_v42 = vpop.permute.xlu2 %553 }
 0x30e   :  { %v559_v43 = vsel %vm410_vm2, %v554_v42, 0 }
 0x30f   :  { %v1994_v29 = vpop.eup %1993  ;;  %568 = vmatpush.bf16.msrb.mxu0 %v559_v43 }
 0x310   :  { %v1996_v44 = vpop.eup %1995  ;;  %v391_v30 = vmul.f32 %v1994_v29, %v1984_v6  ;;  %v380_v31 = vpop.xlane.xlu0 %379 }
 0x311   :  { %v394_v33 = vmul.f32 %v1996_v44, %v1986_v9  ;;  %1997 = vrcp.f32 %v380_v31  ;;  %v425_v34 = vpop.f32.mrf.mxu1  ;;  %v1889_v9 = vld [vmem:[%s2551_s2] sm:$0xff] }
 0x312   :  { %v399_v35 = vpack.c.bf16 %v391_v30, %v391_v30  ;;  %1999 = vrcp.f32 %v377_v25 }
 0x313   :  { %v402_v36 = vpack.c.bf16 %v394_v33, %v394_v33  ;;  %2001 = vrcp.f32 %v371_v23  ;;  %v2095_v33 = vmov 32.0  }
 0x314   :  { %1727 = vmatmul.msk.bf16.vlgmr.msra.gmra.mxu3 %vm121_vm1, %v399_v35  ;;  %2003 = vrcp.f32 %v2095_v33 }
 0x315   :  { %1730 = vmatmul.msk.bf16.vlgmr.msrb.gmra.mxu2 %vm121_vm1, %v402_v36 }
 0x317   :  { %v1998_v37 = vpop.eup %1997 }
 0x318   :  { %v396_v38 = vmul.f32 %v1998_v37, %v1990_v18  ;;  %v2000_v40 = vpop.eup %1999 }
 0x319   :  { %v2002_v45 = vpop.eup %2001  ;;  %v395_v46 = vmul.f32 %v2000_v40, %v1982_v1 }
 0x31a   :  { %v404_v39 = vpack.c.bf16 %v396_v38, %v396_v38  ;;  %v393_v49 = vmul.f32 %v2002_v45, %v2225_v61  ;;  %v2004_v34 = vpop.eup %2003 }
 0x31b   :  { %v403_v50 = vpack.c.bf16 %v395_v46, %v395_v46  ;;  %v646_v35 = vmul.f32 32.0, %v2004_v34  ;;  %vm650_vm5 = vweird.f32 %v2004_v34 }
 0x31c   :  { %1732 = vmatmul.msk.bf16.vlgmr.msrb.gmra.mxu0 %vm121_vm1, %v404_v39  ;;  %v444_v41 = vpop.f32.mrf.mxu2  ;;  %v401_v54 = vpack.c.bf16 %v393_v49, %v393_v49 }
 0x31d   :  { %v647_v36 = vsub.f32 1.0, %v646_v35 }
 0x31f   :  { %v648_v37 = vmul.f32 %v2004_v34, %v647_v36 }
 0x320   :  { %v533_v47 = vpop.permute.xlu1 %532 }
 0x321   :  { %v538_v48 = vsel %vm410_vm2, %v533_v47, 0  ;;  %v649_v38 = vadd.f32 %v2004_v34, %v648_v37 }
 0x322   :  { %547 = vmatpush.bf16.msrb.mxu3 %v538_v48 }
 0x323   :  { %v491_v51 = vpop.permute.xlu0 %490  ;;  %v2276_v39 = vsel %vm650_vm5, %v2004_v34, %v649_v38 }
 0x324   :  { %v496_v52 = vsel %vm410_vm2, %v491_v51, 0  ;;  %v446_v53 = vpop.f32.mrf.mxu2  ;;  %v1892_v51 = vld [vmem:[%s2552_s3 + $0x8] sm:$0xff] }
 0x325   :  { %505 = vmatpush.bf16.msra.mxu1 %v496_v52  ;;  %1731 = vmatmul.msk.bf16.vlgmr.msrb.gmra.mxu3 %vm121_vm1, %v403_v50 }
 0x326   :  { %719 = vmatpush.bf16.msra.mxu2 %v1892_v51 }
 0x328   :  { %1729 = vmatmul.msk.bf16.vlgmr.msra.gmra.mxu1 %vm121_vm1, %v401_v54 }
 0x329   :  { %629 = vmatpush.bf16.msrb.mxu1 %v1890_v8 }
 0x32d   :  { %630 = vmatpush.bf16.msrb.mxu1 %v1889_v9  ;;  %v690_v9 = vperm.slane %v2155_v5, 2 }
 0x381   :  { %v486_v55 = vpop.f32.mrf.mxu0 }
 0x389   :  { %v488_v32 = vpop.f32.mrf.mxu0 }
 0x397   :  { %v465_v56 = vpop.f32.mrf.mxu3 }
 0x398   :  { %v1926_v57 = vpack.i.bf16 %v486_v55, %v465_v56  ;;  %v528_v58 = vpop.f32.mrf.mxu2  ;;  %v1891_v55 = vld [vmem:[%s2552_s3] sm:$0xff] }
 0x399   :  { %v570_v59 = vpop.f32.mrf.mxu0  ;;  %720 = vmatpush.bf16.msra.mxu2 %v1891_v55 }
 0x39a   :  { %1927 = vrot.lane.b32.xlu0 %v1926_v57, %s2092_s11 }
 0x39f   :  { %v467_v60 = vpop.f32.mrf.mxu3 }
 0x3a0   :  { %v530_v61 = vpop.f32.mrf.mxu2 }
 0x3a1   :  { %v572_v62 = vpop.f32.mrf.mxu0 }
 0x3a5   :  { %v507_v63 = vpop.f32.mrf.mxu1 }
 0x3a6   :  { %v1931_v0 = vpack.i.bf16 %v528_v58, %v507_v63 }
 0x3a8   :  { %1932 = vrot.lane.b32.xlu1 %v1931_v0, %s2093_s12  ;;  %v549_v1 = vpop.f32.mrf.mxu3 }
 0x3a9   :  { %v1936_v4 = vpack.i.bf16 %v570_v59, %v549_v1 }
 0x3ab   :  { %1937 = vrot.lane.b32.xlu2 %v1936_v4, %s2094_s13 }
 0x3ad   :  { %v509_v6 = vpop.f32.mrf.mxu1 }
 0x3b0   :  { %v551_v7 = vpop.f32.mrf.mxu3 }
 0x405   :  { %v1938_v13 = vpop.permute.xlu2 %1937 }
 0x406   :  { %v1940_v17 = vunpack.i.h.bf16 %v1938_v13  ;;  %v1939_v18 = vunpack.i.l.bf16 %v1938_v13  ;;  %v693_v13 = vperm.slane %v2155_v5, 3 }
 0x40c   :  { %v1928_v10 = vpop.permute.xlu0 %1927 }
 0x40d   :  { %v1930_v11 = vunpack.i.h.bf16 %v1928_v10  ;;  %v1929_v12 = vunpack.i.l.bf16 %v1928_v10 }
 0x40f   :  { %v599_v19 = vsel %vm121_vm1, %v444_v41, %v1930_v11  ;;  %v598_v20 = vsel %vm121_vm1, %v2243_v28, %v1929_v12 }
 0x41a   :  { %v1933_v14 = vpop.permute.xlu1 %1932 }
 0x41b   :  { %v1935_v15 = vunpack.i.h.bf16 %v1933_v14  ;;  %v1934_v16 = vunpack.i.l.bf16 %v1933_v14 }
 0x41d   :  { %v602_v21 = vsel %vm600_vm3, %v599_v19, %v1935_v15  ;;  %v601_v22 = vsel %vm600_vm3, %v598_v20, %v1934_v16  ;;  %v1900_v20 = vld [vmem:[%s2553_s4 + $0x38] sm:$0xff] }
 0x41e   :  { %v604_v23 = vsel %vm603_vm4, %v601_v22, %v1939_v18  ;;  %v605_v24 = vsel %vm603_vm4, %v602_v21, %v1940_v17  ;;  %795 = vmatpush.bf16.msra.mxu3 %v1900_v20  ;;  %v1899_v21 = vld [vmem:[%s2553_s4 + $0x30] sm:$0xff]  ;;  %v1898_v22 = vld [vmem:[%s2553_s4 + $0x28] sm:$0xff] }
 0x41f   :  { %v606_v25 = vpack.c.bf16 %v605_v24, %v604_v23  ;;  %v1897_v23 = vld [vmem:[%s2553_s4 + $0x20] sm:$0xff]  ;;  %v1896_v24 = vld [vmem:[%s2553_s4 + $0x18] sm:$0xff] }
 0x421   :  { %1741 = vmatmul.msk.bf16.vlgmr.msrb.gmra.mxu1 %vm70_vm0, %v606_v25  ;;  %v1895_v25 = vld [vmem:[%s2553_s4 + $0x10] sm:$0xff] }
 0x422   :  { %796 = vmatpush.bf16.msra.mxu3 %v1899_v21 }
 0x426   :  { %797 = vmatpush.bf16.msra.mxu3 %v1898_v22 }
 0x42a   :  { %798 = vmatpush.bf16.msra.mxu3 %v1897_v23 }
 0x42e   :  { %799 = vmatpush.bf16.msra.mxu3 %v1896_v24 }
 0x432   :  { %800 = vmatpush.bf16.msra.mxu3 %v1895_v25 }
 0x49e   :  { %v632_v27 = vpop.f32.mrf.mxu1 }
 0x49f   :  { %v633_v42 = vadd.f32 %v632_v27, %v607_v26  ;;  %v697_v27 = vperm.slane %v2155_v5, 4 }
 0x4a1   :  { %v637_v43 = vadd.f32 %v633_v42, %v2142_v2 }
 0x4a3   :  { %v639_v29 = vsel %vm70_vm0, %v637_v43, 0.0 }
 0x4a4   :  { %640 = vadd.xlane.f32.xlu0 %v639_v29 }
 0x4a6   :  { %v634_v28 = vpop.f32.mrf.mxu1 }
 0x4a7   :  { %v635_v44 = vadd.f32 %v634_v28, %v607_v26  ;;  %v1894_v26 = vld [vmem:[%s2553_s4 + $0x8] sm:$0xff] }
 0x4a8   :  { %801 = vmatpush.bf16.msra.mxu3 %v1894_v26 }
 0x4a9   :  { %v638_v30 = vadd.f32 %v635_v44, %v2147_v3 }
 0x4ab   :  { %v642_v31 = vsel %vm70_vm0, %v638_v30, 0.0 }
 0x4ac   :  { %643 = vadd.xlane.f32.xlu1 %v642_v31 }
 0x517   :  { %v641_v2 = vpop.xlane.xlu0 %640 }
 0x518   :  { %v652_v40 = vmul.f32 %v2276_v39, %v641_v2 }
 0x51a   :  { %v654_v41 = vsub.f32 %v637_v43, %v652_v40  ;;  %v1893_v43 = vld [vmem:[%s2553_s4] sm:$0xff] }
 0x51b   :  { %802 = vmatpush.bf16.msra.mxu3 %v1893_v43  ;;  %v855_v43 = vperm.slane %v2155_v5, 6 }
 0x51c   :  { %v656_v45 = vmul.f32 %v654_v41, %v654_v41 }
 0x51e   :  { %v658_v3 = vsel %vm70_vm0, %v656_v45, 0.0 }
 0x51f   :  { %v644_v46 = vpop.xlane.xlu1 %643  ;;  %659 = vadd.xlane.f32.xlu2 %v658_v3 }
 0x520   :  { %v653_v47 = vmul.f32 %v2276_v39, %v644_v46 }
 0x522   :  { %v655_v48 = vsub.f32 %v638_v30, %v653_v47 }
 0x524   :  { %v657_v49 = vmul.f32 %v655_v48, %v655_v48 }
 0x526   :  { %v661_v50 = vsel %vm70_vm0, %v657_v49, 0.0 }
 0x527   :  { %662 = vadd.xlane.f32.xlu0 %v661_v50 }
 0x592   :  { %v660_v52 = vpop.xlane.xlu2 %659 }
 0x593   :  { %v664_v53 = vmul.f32 %v660_v52, %v2276_v39  ;;  %v746_v52 = vperm.slane %v2155_v5, 5 }
 0x595   :  { %v666_v54 = vadd.f32 1e-12, %v664_v53 }
 0x597   :  { %2005 = vrsqrt.f32 %v666_v54  ;;  %vm674_vm7 = vweird.f32 %v666_v54 }
 0x59a   :  { %v663_v32 = vpop.xlane.xlu0 %662 }
 0x59b   :  { %v665_v56 = vmul.f32 %v663_v32, %v2276_v39 }
 0x59d   :  { %v2006_v57 = vpop.eup %2005  ;;  %v667_v58 = vadd.f32 1e-12, %v665_v56 }
 0x59e   :  { %v669_v59 = vmul.f32 %v2006_v57, %v666_v54  ;;  %vm675_vm6 = vweird.f32 %v2006_v57 }
 0x59f   :  { %2007 = vrsqrt.f32 %v667_v58  ;;  %vm676_vm8 = vmor %vm674_vm7, %vm675_vm6  ;;  %vm684_vm10 = vweird.f32 %v667_v58 }
 0x5a0   :  { %v670_v60 = vmul.f32 %v2006_v57, %v669_v59 }
 0x5a2   :  { %v671_v61 = vmul.f32 0.5, %v670_v60 }
 0x5a4   :  { %v672_v62 = vsub.f32 1.5, %v671_v61 }
 0x5a5   :  { %v2008_v63 = vpop.eup %2007 }
 0x5a6   :  { %v673_v0 = vmul.f32 %v2006_v57, %v672_v62  ;;  %v679_v1 = vmul.f32 %v2008_v63, %v667_v58  ;;  %vm685_vm9 = vweird.f32 %v2008_v63 }
 0x5a7   :  { %vm686_vm11 = vmor %vm684_vm10, %vm685_vm9 }
 0x5a8   :  { %v680_v4 = vmul.f32 %v2008_v63, %v679_v1  ;;  %v677_v6 = vsel %vm676_vm8, %v2006_v57, %v673_v0 }
 0x5a9   :  { %v688_v10 = vmul.f32 %v677_v6, %v654_v41 }
 0x5aa   :  { %v681_v7 = vmul.f32 0.5, %v680_v4 }
 0x5ab   :  { %v691_v14 = vmul.f32 %v690_v9, %v688_v10 }
 0x5ac   :  { %v682_v8 = vsub.f32 1.5, %v681_v7 }
 0x5ad   :  { %v694_v17 = vadd.f32 %v693_v13, %v691_v14 }
 0x5ae   :  { %v683_v11 = vmul.f32 %v2008_v63, %v682_v8 }
 0x5b0   :  { %v687_v12 = vsel %vm686_vm11, %v2008_v63, %v683_v11 }
 0x5b1   :  { %v689_v15 = vmul.f32 %v687_v12, %v655_v48 }
 0x5b3   :  { %v692_v16 = vmul.f32 %v690_v9, %v689_v15  ;;  %v1902_v9 = vld [vmem:[%s2550_s1 + $0x18] sm:$0xff] }
 0x5b4   :  { %918 = vmatpush.bf16.msra.mxu0 %v1902_v9 }
 0x5b5   :  { %v695_v18 = vadd.f32 %v693_v13, %v692_v16  ;;  %v1901_v13 = vld [vmem:[%s2550_s1 + $0x10] sm:$0xff] }
 0x5b7   :  { %v696_v19 = vpack.c.bf16 %v695_v18, %v694_v17 }
 0x5b8   :  { %919 = vmatpush.bf16.msra.mxu0 %v1901_v13 }
 0x5b9   :  { %1750 = vmatmul.msk.bf16.vlgmr.msra.gmra.mxu2 %vm70_vm0, %v696_v19 }
 0x63c   :  { %v722_v42 = vpop.f32.mrf.mxu2 }
 0x63d   :  { %v723_v29 = vadd.f32 %v722_v42, %v697_v27 }
 0x63f   :  { %v727_v28 = vmul.f32 %v723_v29, %v723_v29 }
 0x641   :  { %v729_v44 = vmul.f32 %v727_v28, %v723_v29 }
 0x643   :  { %v731_v30 = vmul.f32 0.044715, %v729_v44 }
 0x644   :  { %v724_v31 = vpop.f32.mrf.mxu2 }
 0x645   :  { %v733_v33 = vadd.f32 %v731_v30, %v723_v29  ;;  %v725_v34 = vadd.f32 %v724_v31, %v697_v27  ;;  %v858_v30 = vperm.slane %v2155_v5, 7 }
 0x647   :  { %v735_v35 = vmul.f32 0.7978846, %v733_v33  ;;  %v728_v36 = vmul.f32 %v725_v34, %v725_v34 }
 0x649   :  { %v730_v37 = vmul.f32 %v728_v36, %v725_v34  ;;  %2009 = vtanh.f32 %v735_v35 }
 0x64b   :  { %v732_v38 = vmul.f32 0.044715, %v730_v37 }
 0x64d   :  { %v734_v2 = vadd.f32 %v732_v38, %v725_v34  ;;  %v2345_v38 = vld [vmem:[%s2554_s5 + $0x8] sm:$0xff]  ;;  %s2097_s5 = smov 128  }
 0x64e   :  { %v896_v5 = vperm.slane %v2345_v38, 0 }
 0x64f   :  { %v736_v40 = vmul.f32 0.7978846, %v734_v2  ;;  %v2010_v41 = vpop.eup %2009 }
 0x650   :  { %v739_v45 = vadd.f32 1.0, %v2010_v41 }
 0x651   :  { %2011 = vtanh.f32 %v736_v40 }
 0x652   :  { %v741_v46 = vmul.f32 0.5, %v739_v45 }
 0x654   :  { %v743_v49 = vmul.f32 %v741_v46, %v723_v29 }
 0x657   :  { %v2012_v3 = vpop.eup %2011 }
 0x658   :  { %v740_v47 = vadd.f32 1.0, %v2012_v3 }
 0x65a   :  { %v742_v48 = vmul.f32 0.5, %v740_v47 }
 0x65c   :  { %v744_v50 = vmul.f32 %v742_v48, %v725_v34 }
 0x65e   :  { %v745_v51 = vpack.c.bf16 %v744_v50, %v743_v49 }
 0x660   :  { %803 = vmatmul.bf16.vlgmr.msra.gmra.mxu3 %v745_v51 }
 0x6e3   :  { %v804_v53 = vpop.f32.mrf.mxu3 }
 0x6e4   :  { %v805_v54 = vadd.f32 %v804_v53, %v746_v52 }
 0x6e6   :  { %v809_v55 = vadd.f32 %v805_v54, %v694_v17 }
 0x6e8   :  { %v811_v32 = vsel %vm70_vm0, %v809_v55, 0.0 }
 0x6e9   :  { %812 = vadd.xlane.f32.xlu1 %v811_v32 }
 0x6eb   :  { %v806_v56 = vpop.f32.mrf.mxu3 }
 0x6ec   :  { %v807_v57 = vadd.f32 %v806_v56, %v746_v52 }
 0x6ee   :  { %v810_v58 = vadd.f32 %v807_v57, %v695_v18 }
 0x6f0   :  { %v814_v59 = vsel %vm70_vm0, %v810_v58, 0.0 }
 0x6f1   :  { %815 = vadd.xlane.f32.xlu2 %v814_v59 }
 0x75c   :  { %v813_v60 = vpop.xlane.xlu1 %812 }
 0x75d   :  { %v817_v61 = vmul.f32 %v813_v60, %v2276_v39 }
 0x75f   :  { %v819_v62 = vsub.f32 %v809_v55, %v817_v61 }
 0x761   :  { %v821_v63 = vmul.f32 %v819_v62, %v819_v62 }
 0x763   :  { %v823_v0 = vsel %vm70_vm0, %v821_v63, 0.0 }
 0x764   :  { %v816_v1 = vpop.xlane.xlu2 %815  ;;  %824 = vadd.xlane.f32.xlu0 %v823_v0 }
 0x765   :  { %v818_v4 = vmul.f32 %v816_v1, %v2276_v39 }
 0x767   :  { %v820_v6 = vsub.f32 %v810_v58, %v818_v4 }
 0x769   :  { %v822_v7 = vmul.f32 %v820_v6, %v820_v6 }
 0x76b   :  { %v826_v8 = vsel %vm70_vm0, %v822_v7, 0.0 }
 0x76c   :  { %827 = vadd.xlane.f32.xlu1 %v826_v8 }
 0x7d7   :  { %v825_v10 = vpop.xlane.xlu0 %824 }
 0x7d8   :  { %v829_v11 = vmul.f32 %v825_v10, %v2276_v39 }
 0x7da   :  { %v831_v12 = vadd.f32 1e-12, %v829_v11 }
 0x7dc   :  { %2013 = vrsqrt.f32 %v831_v12  ;;  %vm839_vm13 = vweird.f32 %v831_v12 }
 0x7df   :  { %v828_v14 = vpop.xlane.xlu1 %827 }
 0x7e0   :  { %v830_v15 = vmul.f32 %v828_v14, %v2276_v39 }
 0x7e2   :  { %v2014_v16 = vpop.eup %2013  ;;  %v832_v17 = vadd.f32 1e-12, %v830_v15 }
 0x7e3   :  { %v834_v18 = vmul.f32 %v2014_v16, %v831_v12  ;;  %vm840_vm12 = vweird.f32 %v2014_v16 }
 0x7e4   :  { %2015 = vrsqrt.f32 %v832_v17  ;;  %vm841_vm14 = vmor %vm839_vm13, %vm840_vm12  ;;  %vm849_vm5 = vweird.f32 %v832_v17 }
 0x7e5   :  { %v835_v19 = vmul.f32 %v2014_v16, %v834_v18 }
 0x7e7   :  { %v836_v20 = vmul.f32 0.5, %v835_v19 }
 0x7e9   :  { %v837_v21 = vsub.f32 1.5, %v836_v20 }
 0x7ea   :  { %v2016_v22 = vpop.eup %2015 }
 0x7eb   :  { %v838_v23 = vmul.f32 %v2014_v16, %v837_v21  ;;  %v844_v24 = vmul.f32 %v2016_v22, %v832_v17  ;;  %vm850_vm15 = vweird.f32 %v2016_v22 }
 0x7ec   :  { %vm851_vm6 = vmor %vm849_vm5, %vm850_vm15 }
 0x7ed   :  { %v845_v25 = vmul.f32 %v2016_v22, %v844_v24  ;;  %v842_v26 = vsel %vm841_vm14, %v2014_v16, %v838_v23 }
 0x7ee   :  { %v853_v29 = vmul.f32 %v842_v26, %v819_v62 }
 0x7ef   :  { %v846_v27 = vmul.f32 0.5, %v845_v25 }
 0x7f0   :  { %v856_v31 = vmul.f32 %v855_v43, %v853_v29 }
 0x7f1   :  { %v847_v42 = vsub.f32 1.5, %v846_v27 }
 0x7f2   :  { %v2335_v35 = vadd.f32 %v858_v30, %v856_v31 }
 0x7f3   :  { %v848_v28 = vmul.f32 %v2016_v22, %v847_v42 }
 0x7f5   :  { %v852_v44 = vsel %vm851_vm6, %v2016_v22, %v848_v28 }
 0x7f6   :  { %v854_v33 = vmul.f32 %v852_v44, %v820_v6 }
 0x7f8   :  { %v857_v34 = vmul.f32 %v855_v43, %v854_v33 }
 0x7fa   :  { %v2337_v36 = vadd.f32 %v858_v30, %v857_v34 }
 0x7fc   :  { %v895_v37 = vpack.c.bf16 %v2337_v36, %v2335_v35 }
 0x7fe   :  { %1820 = vmatmul.msk.bf16.vlgmr.msra.gmra.mxu0 %vm70_vm0, %v895_v37 }
 0x87b   :  { %v921_v2 = vpop.f32.mrf.mxu0 }
 0x87c   :  { %v922_v40 = vadd.f32 %v921_v2, %v896_v5 }
 0x87e   :  { %v946_v46 = vpack.c.bf16 %v922_v40, %v922_v40 }
 0x880   :  { %v955_v48 = vunpack.c.l.b16 %v946_v46 }
 0x882   :  { %v2351_v50 = vpack.c.b16 %v955_v48, %v955_v48 }
 0x883   :  { %v923_v41 = vpop.f32.mrf.mxu0 }
 0x884   :  { %v924_v45 = vadd.f32 %v923_v41, %v896_v5 }
 0x886   :  { %v1951_v3 = vpack.i.bf16 %v924_v45, %v922_v40  ;;  %v947_v47 = vpack.c.bf16 %v924_v45, %v924_v45 }
 0x888   :  { %1952 = vrot.lane.b32.xlu1 %v1951_v3, %s2089_s8  ;;  %1947 = vrot.lane.b32.xlu0 %v1951_v3, %s2087_s7  ;;  %v979_v49 = vunpack.c.l.b16 %v947_v47 }
 0x889   :  { %1942 = vrot.lane.b32.xlu2 %v1951_v3, %s2088_s0 }
 0x88a   :  { %v2353_v51 = vpack.c.b16 %v979_v49, %v979_v49 }
 0x890   :  { %957 = vrot.lane.b32.xlu0 %v2351_v50, %s2090_s9 }
 0x891   :  { %981 = vrot.lane.b32.xlu2 %v2353_v51, %s2090_s9 }
 0x8e3   :  { %v1943_v52 = vpop.permute.xlu2 %1942 }
 0x8e4   :  { %v1945_v53 = vunpack.i.h.bf16 %v1943_v52  ;;  %v1944_v54 = vunpack.i.l.bf16 %v1943_v52 }
 0x8e6   :  { %v949_v55 = vpack.c.bf16 %v1945_v53, %v1945_v53  ;;  %v948_v32 = vpack.c.bf16 %v1944_v54, %v1944_v54 }
 0x8e8   :  { %v1027_v56 = vunpack.c.l.b16 %v949_v55  ;;  %v1003_v57 = vunpack.c.l.b16 %v948_v32 }
 0x8ea   :  { %v2359_v58 = vpack.c.b16 %v1003_v57, %v1003_v57  ;;  %v2361_v59 = vpack.c.b16 %v1027_v56, %v1027_v56 }
 0x8eb   :  { %v982_v60 = vpop.permute.xlu2 %981 }
 0x8ec   :  { %v987_v61 = vsel %vm121_vm1, %v982_v60, 0  ;;  %1005 = vrot.lane.b32.xlu1 %v2359_v58, %s2090_s9  ;;  %1029 = vrot.lane.b32.xlu0 %v2361_v59, %s2090_s9 }
 0x8ed   :  { %996 = vmatpush.bf16.xpose.msrb.mxu2 %v987_v61 }
 0x8f4   :  { %1822 = vmatmul.msk.bf16.vlgmr.msrb.gmra.mxu2 %vm121_vm1, %v947_v47 }
 0x8fa   :  { %v1953_v62 = vpop.permute.xlu1 %1952  ;;  %v1948_v63 = vpop.permute.xlu0 %1947 }
 0x8fb   :  { %v1954_v0 = vunpack.i.l.bf16 %v1953_v62  ;;  %v1950_v1 = vunpack.i.h.bf16 %v1948_v63  ;;  %v1949_v4 = vunpack.i.l.bf16 %v1948_v63  ;;  %v1955_v6 = vunpack.i.h.bf16 %v1953_v62 }
 0x8fd   :  { %v952_v7 = vpack.c.bf16 %v1954_v0, %v1954_v0  ;;  %v951_v8 = vpack.c.bf16 %v1950_v1, %v1950_v1  ;;  %v950_v9 = vpack.c.bf16 %v1949_v4, %v1949_v4  ;;  %v953_v13 = vpack.c.bf16 %v1955_v6, %v1955_v6 }
 0x8ff   :  { %v1099_v10 = vunpack.c.l.b16 %v952_v7  ;;  %v1075_v11 = vunpack.c.l.b16 %v951_v8  ;;  %v1051_v12 = vunpack.c.l.b16 %v950_v9  ;;  %v1123_v19 = vunpack.c.l.b16 %v953_v13 }
 0x901   :  { %v2369_v14 = vpack.c.b16 %v1051_v12, %v1051_v12  ;;  %v2371_v15 = vpack.c.b16 %v1075_v11, %v1075_v11  ;;  %v2373_v16 = vpack.c.b16 %v1099_v10, %v1099_v10  ;;  %v2382_v20 = vpack.c.b16 %v1123_v19, %v1123_v19 }
 0x902   :  { %v958_v17 = vpop.permute.xlu0 %957 }
 0x903   :  { %v963_v18 = vsel %vm121_vm1, %v958_v17, 0  ;;  %1053 = vrot.lane.b32.xlu2 %v2369_v14, %s2090_s9  ;;  %1077 = vrot.lane.b32.xlu1 %v2371_v15, %s2090_s9 }
 0x904   :  { %1101 = vrot.lane.b32.xlu0 %v2373_v16, %s2090_s9  ;;  %972 = vmatpush.bf16.xpose.msra.mxu1 %v963_v18 }
 0x90b   :  { %1125 = vrot.lane.b32.xlu2 %v2382_v20, %s2090_s9  ;;  %1821 = vmatmul.msk.bf16.vlgmr.msra.gmra.mxu1 %vm121_vm1, %v946_v46 }
 0x95d   :  { %v1054_v21 = vpop.permute.xlu2 %1053 }
 0x95e   :  { %v1059_v22 = vsel %vm121_vm1, %v1054_v21, 0  ;;  %v1006_v23 = vpop.permute.xlu1 %1005  ;;  %v1030_v24 = vpop.permute.xlu0 %1029 }
 0x95f   :  { %v1011_v25 = vsel %vm121_vm1, %v1006_v23, 0  ;;  %v1035_v26 = vsel %vm121_vm1, %v1030_v24, 0  ;;  %1068 = vmatpush.bf16.xpose.msra.mxu2 %v1059_v22 }
 0x960   :  { %1020 = vmatpush.bf16.xpose.msrb.mxu0 %v1011_v25  ;;  %1044 = vmatpush.bf16.xpose.msrb.mxu1 %v1035_v26 }
 0x965   :  { %v1126_v27 = vpop.permute.xlu2 %1125 }
 0x966   :  { %v1131_v42 = vsel %vm121_vm1, %v1126_v27, 0  ;;  %1825 = vmatmul.msk.bf16.vlgmr.msra.gmra.mxu2 %vm121_vm1, %v950_v9 }
 0x967   :  { %1823 = vmatmul.msk.bf16.vlgmr.msrb.gmra.mxu0 %vm121_vm1, %v948_v32  ;;  %1824 = vmatmul.msk.bf16.vlgmr.msrb.gmra.mxu1 %vm121_vm1, %v949_v55 }
 0x968   :  { %1140 = vmatpush.bf16.xpose.msra.mxu1 %v1131_v42 }
 0x975   :  { %v1078_v43 = vpop.permute.xlu1 %1077 }
 0x976   :  { %v1083_v29 = vsel %vm121_vm1, %v1078_v43, 0  ;;  %v1102_v28 = vpop.permute.xlu0 %1101 }
 0x977   :  { %v1107_v44 = vsel %vm121_vm1, %v1102_v28, 0  ;;  %v998_v30 = vpop.f32.mrf.mxu2  ;;  %1828 = vmatmul.msk.bf16.vlgmr.msra.gmra.mxu1 %vm121_vm1, %v953_v13  ;;  %1092 = vmatpush.bf16.xpose.msrb.mxu3 %v1083_v29 }
 0x978   :  { %1116 = vmatpush.bf16.xpose.msra.mxu0 %v1107_v44  ;;  %v1149_v31 = vsel %vm121_vm1, %v998_v30, -inf }
 0x979   :  { %1150 = vmax.xlane.f32.xlu0 %v1149_v31 }
 0x97e   :  { %1826 = vmatmul.msk.bf16.vlgmr.msrb.gmra.mxu3 %vm121_vm1, %v951_v8 }
 0x97f   :  { %v1000_v33 = vpop.f32.mrf.mxu2  ;;  %1827 = vmatmul.msk.bf16.vlgmr.msra.gmra.mxu0 %vm121_vm1, %v952_v7 }
 0x988   :  { %v974_v34 = vpop.f32.mrf.mxu1 }
 0x989   :  { %v1146_v37 = vsel %vm121_vm1, %v974_v34, -inf }
 0x98a   :  { %1147 = vmax.xlane.f32.xlu1 %v1146_v37 }
 0x990   :  { %v976_v2 = vpop.f32.mrf.mxu1 }
 0x9e4   :  { %v1022_v5 = vpop.f32.mrf.mxu0  ;;  %v1046_v40 = vpop.f32.mrf.mxu1 }
 0x9e5   :  { %v1152_v41 = vsel %vm121_vm1, %v1022_v5, -inf  ;;  %v1155_v45 = vsel %vm121_vm1, %v1046_v40, -inf }
 0x9e6   :  { %1153 = vmax.xlane.f32.xlu2 %v1152_v41  ;;  %1156 = vmax.xlane.f32.xlu1 %v1155_v45 }
 0x9e9   :  { %v1070_v3 = vpop.f32.mrf.mxu2 }
 0x9ea   :  { %v1158_v46 = vsel %vm121_vm1, %v1070_v3, -inf }
 0x9eb   :  { %1159 = vmax.xlane.f32.xlu0 %v1158_v46 }
 0x9ec   :  { %v1024_v47 = vpop.f32.mrf.mxu0  ;;  %v1048_v48 = vpop.f32.mrf.mxu1 }
 0x9ed   :  { %v1151_v1 = vpop.xlane.xlu0 %1150 }
 0x9f1   :  { %v1072_v49 = vpop.f32.mrf.mxu2 }
 0x9f4   :  { %v2404_v52 = vpop.f32.mrf.mxu1 }
 0x9f5   :  { %v1167_v7 = vsel %vm121_vm1, %v2404_v52, -inf }
 0x9fc   :  { %v2406_v53 = vpop.f32.mrf.mxu0  ;;  %v1144_v54 = vpop.f32.mrf.mxu1 }
 0x9fd   :  { %v1148_v55 = vpop.xlane.xlu1 %1147 }
 0x9fe   :  { %v1170_v32 = vsub.f32 %v974_v34, %v1148_v55 }
 0x9ff   :  { %1242 = vrot.lane.b32.xlu1 %v2351_v50, %s2091_s10  ;;  %1263 = vrot.lane.b32.xlu0 %v2353_v51, %s2091_s10  ;;  %v1171_v50 = vsub.f32 %v998_v30, %v1151_v1  ;;  %v1164_v51 = vsel %vm121_vm1, %v2406_v53, -inf }
 0xa00   :  { %v1178_v56 = vmul.f32 1.442695, %v1170_v32 }
 0xa01   :  { %v1094_v57 = vpop.f32.mrf.mxu3  ;;  %v1180_v4 = vmul.f32 1.442695, %v1171_v50 }
 0xa02   :  { %2017 = vpow2.f32 %v1178_v56  ;;  %v1161_v0 = vsel %vm121_vm1, %v1094_v57, -inf }
 0xa03   :  { %2019 = vpow2.f32 %v1180_v4 }
 0xa04   :  { %v1120_v60 = vpop.f32.mrf.mxu0 }
 0xa07   :  { %1305 = vrot.lane.b32.xlu0 %v2361_v59, %s2091_s10 }
 0xa08   :  { %v2018_v61 = vpop.eup %2017 }
 0xa09   :  { %v1096_v62 = vpop.f32.mrf.mxu3  ;;  %v1194_v63 = vsel %vm121_vm1, %v2018_v61, 0.0  ;;  %v2420_v59 = vpop.eup %2019 }
 0xa0a   :  { %1195 = vadd.xlane.f32.xlu2 %v1194_v63  ;;  %v1197_v6 = vsel %vm121_vm1, %v2420_v59, 0.0 }
 0xa12   :  { %1162 = vmax.xlane.f32.xlu2 %v1161_v0 }
 0xa29   :  { %1165 = vmax.xlane.f32.xlu1 %v1164_v51 }
 0xa2a   :  { %1284 = vrot.lane.b32.xlu2 %v2359_v58, %s2091_s10 }
 0xa31   :  { %1198 = vadd.xlane.f32.xlu1 %v1197_v6  ;;  %1168 = vmax.xlane.f32.xlu0 %v1167_v7 }
 0xa59   :  { %v1154_v8 = vpop.xlane.xlu2 %1153  ;;  %v1157_v9 = vpop.xlane.xlu1 %1156 }
 0xa5a   :  { %v1172_v10 = vsub.f32 %v1022_v5, %v1154_v8  ;;  %v1173_v11 = vsub.f32 %v1046_v40, %v1157_v9 }
 0xa5c   :  { %v1182_v12 = vmul.f32 1.442695, %v1172_v10  ;;  %v1184_v13 = vmul.f32 1.442695, %v1173_v11 }
 0xa5e   :  { %2021 = vpow2.f32 %v1182_v12  ;;  %v1160_v17 = vpop.xlane.xlu0 %1159 }
 0xa5f   :  { %2023 = vpow2.f32 %v1184_v13  ;;  %v1174_v58 = vsub.f32 %v1070_v3, %v1160_v17 }
 0xa61   :  { %v1186_v18 = vmul.f32 1.442695, %v1174_v58 }
 0xa63   :  { %2025 = vpow2.f32 %v1186_v18 }
 0xa64   :  { %v2426_v19 = vpop.eup %2021 }
 0xa65   :  { %v2428_v21 = vpop.eup %2023  ;;  %v1200_v22 = vsel %vm121_vm1, %v2426_v19, 0.0 }
 0xa66   :  { %v1203_v23 = vsel %vm121_vm1, %v2428_v21, 0.0  ;;  %1201 = vadd.xlane.f32.xlu0 %v1200_v22 }
 0xa67   :  { %1204 = vadd.xlane.f32.xlu2 %v1203_v23 }
 0xa69   :  { %v2434_v24 = vpop.eup %2025 }
 0xa6a   :  { %v1206_v25 = vsel %vm121_vm1, %v2434_v24, 0.0 }
 0xa6b   :  { %1207 = vadd.xlane.f32.xlu1 %v1206_v25 }
 0xa71   :  { %v1243_v26 = vpop.permute.xlu1 %1242  ;;  %v1264_v27 = vpop.permute.xlu0 %1263 }
 0xa72   :  { %v1248_v42 = vsel %vm410_vm2, %v1243_v26, 0  ;;  %v1269_v43 = vsel %vm410_vm2, %v1264_v27, 0 }
 0xa73   :  { %1257 = vmatpush.bf16.msrb.mxu2 %v1248_v42  ;;  %1278 = vmatpush.bf16.msra.mxu3 %v1269_v43 }
 0xa79   :  { %v1306_v29 = vpop.permute.xlu0 %1305 }
 0xa7a   :  { %1347 = vrot.lane.b32.xlu0 %v2371_v15, %s2091_s10  ;;  %v1311_v28 = vsel %vm410_vm2, %v1306_v29, 0 }
 0xa7b   :  { %1320 = vmatpush.bf16.msrb.mxu1 %v1311_v28 }
 0xa7d   :  { %v1196_v44 = vpop.xlane.xlu2 %1195 }
 0xa7e   :  { %2027 = vrcp.f32 %v1196_v44 }
 0xa84   :  { %v2028_v30 = vpop.eup %2027  ;;  %1326 = vrot.lane.b32.xlu1 %v2369_v14, %s2091_s10 }
 0xa85   :  { %v1226_v31 = vmul.f32 %v2028_v30, %v2018_v61  ;;  %v1163_v33 = vpop.xlane.xlu2 %1162 }
 0xa86   :  { %v1175_v34 = vsub.f32 %v1094_v57, %v1163_v33 }
 0xa87   :  { %v1234_v37 = vpack.c.bf16 %v1226_v31, %v1226_v31 }
 0xa88   :  { %v1188_v2 = vmul.f32 1.442695, %v1175_v34 }
 0xa89   :  { %1829 = vmatmul.msk.bf16.vlgmr.msrb.gmra.mxu2 %vm121_vm1, %v1234_v37 }
 0xa8a   :  { %2029 = vpow2.f32 %v1188_v2 }
 0xa8d   :  { %v1285_v5 = vpop.permute.xlu2 %1284 }
 0xa8e   :  { %v1290_v15 = vsel %vm410_vm2, %v1285_v5, 0 }
 0xa8f   :  { %1299 = vmatpush.bf16.msrb.mxu0 %v1290_v15 }
 0xa90   :  { %v2030_v40 = vpop.eup %2029 }
 0xa91   :  { %v1209_v41 = vsel %vm121_vm1, %v2030_v40, 0.0 }
 0xa92   :  { %1210 = vadd.xlane.f32.xlu2 %v1209_v41 }
 0xa9c   :  { %v1166_v45 = vpop.xlane.xlu1 %1165 }
 0xa9d   :  { %v1176_v3 = vsub.f32 %v2406_v53, %v1166_v45 }
 0xa9f   :  { %v1190_v14 = vmul.f32 1.442695, %v1176_v3 }
 0xaa1   :  { %2031 = vpow2.f32 %v1190_v14 }
 0xaa4   :  { %v1199_v46 = vpop.xlane.xlu1 %1198  ;;  %v1169_v47 = vpop.xlane.xlu0 %1168 }
 0xaa5   :  { %2033 = vrcp.f32 %v1199_v46  ;;  %v1177_v48 = vsub.f32 %v2404_v52, %v1169_v47 }
 0xaa7   :  { %v2032_v49 = vpop.eup %2031  ;;  %v1192_v54 = vmul.f32 1.442695, %v1177_v48  ;;  %v1904_v48 = vld [vmem:[%s2551_s2 + $0x18] sm:$0xff] }
 0xaa8   :  { %v1212_v55 = vsel %vm121_vm1, %v2032_v49, 0.0 }
 0xaa9   :  { %2035 = vpow2.f32 %v1192_v54  ;;  %1213 = vadd.xlane.f32.xlu0 %v1212_v55 }
 0xaab   :  { %v2034_v32 = vpop.eup %2033 }
 0xaac   :  { %v1227_v56 = vmul.f32 %v2034_v32, %v2420_v59 }
 0xaae   :  { %v1235_v57 = vpack.c.bf16 %v1227_v56, %v1227_v56 }
 0xaaf   :  { %v2036_v60 = vpop.eup %2035 }
 0xab0   :  { %1830 = vmatmul.msk.bf16.vlgmr.msra.gmra.mxu3 %vm121_vm1, %v1235_v57  ;;  %v1215_v53 = vsel %vm121_vm1, %v2036_v60, 0.0 }
 0xab1   :  { %1216 = vadd.xlane.f32.xlu2 %v1215_v53 }
 0xabd   :  { %1389 = vrot.lane.b32.xlu0 %v2382_v20, %s2091_s10 }
 0xac9   :  { %1368 = vrot.lane.b32.xlu2 %v2373_v16, %s2091_s10 }
 0xad9   :  { %v1202_v52 = vpop.xlane.xlu0 %1201 }
 0xada   :  { %v1205_v61 = vpop.xlane.xlu2 %1204  ;;  %2037 = vrcp.f32 %v1202_v52 }
 0xadb   :  { %2039 = vrcp.f32 %v1205_v61 }
 0xade   :  { %v1208_v20 = vpop.xlane.xlu1 %1207 }
 0xadf   :  { %2041 = vrcp.f32 %v1208_v20 }
 0xae0   :  { %v2038_v62 = vpop.eup %2037 }
 0xae1   :  { %v2040_v63 = vpop.eup %2039  ;;  %v1228_v0 = vmul.f32 %v2038_v62, %v2426_v19 }
 0xae2   :  { %v1229_v1 = vmul.f32 %v2040_v63, %v2428_v21 }
 0xae3   :  { %v1236_v50 = vpack.c.bf16 %v1228_v0, %v1228_v0 }
 0xae4   :  { %v1237_v4 = vpack.c.bf16 %v1229_v1, %v1229_v1 }
 0xae5   :  { %1831 = vmatmul.msk.bf16.vlgmr.msrb.gmra.mxu0 %vm121_vm1, %v1236_v50  ;;  %v2042_v59 = vpop.eup %2041 }
 0xae6   :  { %1832 = vmatmul.msk.bf16.vlgmr.msrb.gmra.mxu1 %vm121_vm1, %v1237_v4  ;;  %v1230_v6 = vmul.f32 %v2042_v59, %v2434_v24 }
 0xae8   :  { %v1238_v9 = vpack.c.bf16 %v1230_v6, %v1230_v6 }
 0xaec   :  { %v1348_v51 = vpop.permute.xlu0 %1347 }
 0xaed   :  { %v1353_v16 = vsel %vm410_vm2, %v1348_v51, 0  ;;  %v1441_v51 = vperm.slane %v2345_v38, 1 }
 0xaee   :  { %1362 = vmatpush.bf16.msrb.mxu3 %v1353_v16 }
 0xaf6   :  { %v1327_v7 = vpop.permute.xlu1 %1326 }
 0xaf7   :  { %v1332_v8 = vsel %vm410_vm2, %v1327_v7, 0 }
 0xaf8   :  { %1341 = vmatpush.bf16.msra.mxu2 %v1332_v8 }
 0xafb   :  { %1833 = vmatmul.msk.bf16.vlgmr.msra.gmra.mxu2 %vm121_vm1, %v1238_v9 }
 0xafc   :  { %1463 = vmatpush.bf16.msrb.mxu2 %v1904_v48 }
 0xb05   :  { %v1211_v10 = vpop.xlane.xlu2 %1210 }
 0xb06   :  { %2043 = vrcp.f32 %v1211_v10 }
 0xb0c   :  { %v2044_v11 = vpop.eup %2043  ;;  %v1259_v12 = vpop.f32.mrf.mxu2 }
 0xb0d   :  { %v1231_v13 = vmul.f32 %v2044_v11, %v2030_v40 }
 0xb0f   :  { %v1239_v17 = vpack.c.bf16 %v1231_v13, %v1231_v13 }
 0xb11   :  { %1834 = vmatmul.msk.bf16.vlgmr.msrb.gmra.mxu3 %vm121_vm1, %v1239_v17 }
 0xb14   :  { %v1261_v58 = vpop.f32.mrf.mxu2 }
 0xb1c   :  { %v1214_v18 = vpop.xlane.xlu0 %1213 }
 0xb1d   :  { %2045 = vrcp.f32 %v1214_v18 }
 0xb23   :  { %v2046_v21 = vpop.eup %2045 }
 0xb24   :  { %v1217_v19 = vpop.xlane.xlu2 %1216  ;;  %v1232_v23 = vmul.f32 %v2046_v21, %v2032_v49  ;;  %v1903_v49 = vld [vmem:[%s2551_s2 + $0x10] sm:$0xff] }
 0xb25   :  { %2047 = vrcp.f32 %v1217_v19  ;;  %1464 = vmatpush.bf16.msrb.mxu2 %v1903_v49 }
 0xb26   :  { %v1240_v27 = vpack.c.bf16 %v1232_v23, %v1232_v23 }
 0xb2b   :  { %v2048_v22 = vpop.eup %2047 }
 0xb2c   :  { %v1369_v24 = vpop.permute.xlu2 %1368  ;;  %v1233_v26 = vmul.f32 %v2048_v22, %v2036_v60 }
 0xb2d   :  { %v1374_v25 = vsel %vm410_vm2, %v1369_v24, 0 }
 0xb2e   :  { %1383 = vmatpush.bf16.msra.mxu0 %v1374_v25  ;;  %v1241_v29 = vpack.c.bf16 %v1233_v26, %v1233_v26 }
 0xb2f   :  { %v1390_v42 = vpop.permute.xlu0 %1389 }
 0xb30   :  { %v1395_v43 = vsel %vm410_vm2, %v1390_v42, 0 }
 0xb31   :  { %1404 = vmatpush.bf16.msra.mxu1 %v1395_v43  ;;  %1835 = vmatmul.msk.bf16.vlgmr.msra.gmra.mxu0 %vm121_vm1, %v1240_v27  ;;  %v1905_v27 = vld [vmem:[%s2552_s3 + $0x10] sm:$0xff] }
 0xb33   :  { %v1280_v28 = vpop.f32.mrf.mxu3 }
 0xb34   :  { %1836 = vmatmul.msk.bf16.vlgmr.msra.gmra.mxu1 %vm121_vm1, %v1241_v29 }
 0xb3b   :  { %v1282_v44 = vpop.f32.mrf.mxu3 }
 0xb62   :  { %v1301_v30 = vpop.f32.mrf.mxu0 }
 0xb63   :  { %v1322_v31 = vpop.f32.mrf.mxu1 }
 0xb64   :  { %v1956_v33 = vpack.i.bf16 %v1322_v31, %v1301_v30 }
 0xb66   :  { %1957 = vrot.lane.b32.xlu1 %v1956_v33, %s2092_s11 }
 0xb6a   :  { %v1303_v34 = vpop.f32.mrf.mxu0 }
 0xb6b   :  { %v1324_v37 = vpop.f32.mrf.mxu1 }
 0xb7e   :  { %v1343_v2 = vpop.f32.mrf.mxu2 }
 0xb86   :  { %v1345_v5 = vpop.f32.mrf.mxu2 }
 0xb94   :  { %v1364_v15 = vpop.f32.mrf.mxu3 }
 0xb95   :  { %v1961_v40 = vpack.i.bf16 %v1364_v15, %v1343_v2 }
 0xb97   :  { %1962 = vrot.lane.b32.xlu2 %v1961_v40, %s2093_s12 }
 0xb9c   :  { %v1366_v41 = vpop.f32.mrf.mxu3 }
 0xbae   :  { %v1385_v45 = vpop.f32.mrf.mxu0 }
 0xbb1   :  { %v1406_v3 = vpop.f32.mrf.mxu1 }
 0xbb2   :  { %v1966_v14 = vpack.i.bf16 %v1406_v3, %v1385_v45  ;;  %v1517_v45 = vperm.slane %v2345_v38, 2 }
 0xbb4   :  { %1967 = vrot.lane.b32.xlu0 %v1966_v14, %s2094_s13 }
 0xbb6   :  { %v1387_v46 = vpop.f32.mrf.mxu0 }
 0xbb9   :  { %v1408_v47 = vpop.f32.mrf.mxu1 }
 0xbba   :  { %v1520_v47 = vperm.slane %v2345_v38, 3 }
 0xbd8   :  { %v1958_v54 = vpop.permute.xlu1 %1957 }
 0xbd9   :  { %v1960_v32 = vunpack.i.h.bf16 %v1958_v54  ;;  %v1959_v56 = vunpack.i.l.bf16 %v1958_v54 }
 0xbdb   :  { %v1435_v52 = vsel %vm121_vm1, %v1280_v28, %v1960_v32  ;;  %v1434_v61 = vsel %vm121_vm1, %v1259_v12, %v1959_v56 }
 0xbf1   :  { %v1963_v55 = vpop.permute.xlu2 %1962 }
 0xbf2   :  { %v1965_v57 = vunpack.i.h.bf16 %v1963_v55  ;;  %v1964_v60 = vunpack.i.l.bf16 %v1963_v55 }
 0xbf4   :  { %v1437_v0 = vsel %vm600_vm3, %v1435_v52, %v1965_v57  ;;  %v1436_v1 = vsel %vm600_vm3, %v1434_v61, %v1964_v60  ;;  %v1914_v57 = vld [vmem:[%s2553_s4 + $0x78] sm:$0xff]  ;;  %v1913_v60 = vld [vmem:[%s2553_s4 + $0x70] sm:$0xff]  ;;  %v1911_v52 = vld [vmem:[%s2553_s4 + $0x60] sm:$0xff] }
 0xbf5   :  { %1622 = vmatpush.bf16.msrb.mxu0 %v1914_v57  ;;  %v1910_v61 = vld [vmem:[%s2553_s4 + $0x58] sm:$0xff] }
 0xbf9   :  { %1623 = vmatpush.bf16.msrb.mxu0 %v1913_v60 }
 0xc26   :  { %v1968_v53 = vpop.permute.xlu0 %1967 }
 0xc27   :  { %v1970_v62 = vunpack.i.h.bf16 %v1968_v53  ;;  %v1969_v63 = vunpack.i.l.bf16 %v1968_v53  ;;  %v1912_v53 = vld [vmem:[%s2553_s4 + $0x68] sm:$0xff] }
 0xc28   :  { %1624 = vmatpush.bf16.msrb.mxu0 %v1912_v53 }
 0xc29   :  { %v1439_v50 = vsel %vm603_vm4, %v1437_v0, %v1970_v62  ;;  %v1438_v4 = vsel %vm603_vm4, %v1436_v1, %v1969_v63  ;;  %v1909_v62 = vld [vmem:[%s2553_s4 + $0x50] sm:$0xff]  ;;  %v1908_v63 = vld [vmem:[%s2553_s4 + $0x48] sm:$0xff]  ;;  %v1524_v0 = vperm.slane %v2345_v38, 4 }
 0xc2a   :  { %v1440_v20 = vpack.c.bf16 %v1439_v50, %v1438_v4  ;;  %v1907_v50 = vld [vmem:[%s2553_s4 + $0x40] sm:$0xff]  ;;  %s2096_s4 = smov [#allocation2]  }
 0xc2b   :  { %s1694_s23 = sshll.u32 %s2096_s4, 4  ;;  %s1695_s23 = int_to_ptr.vmem [resolvable:$true] %s1694_s23 }
 0xc2c   :  { %1845 = vmatmul.msk.bf16.vlgmr.msrb.gmra.mxu2 %vm70_vm0, %v1440_v20  ;;  %1625 = vmatpush.bf16.msrb.mxu0 %v1911_v52  ;;  %v1682_v52 = vperm.slane %v2345_v38, 6 }
 0xc30   :  { %1626 = vmatpush.bf16.msrb.mxu0 %v1910_v61 }
 0xc34   :  { %1627 = vmatpush.bf16.msrb.mxu0 %v1909_v62 }
 0xc38   :  { %1628 = vmatpush.bf16.msrb.mxu0 %v1908_v63 }
 0xc3c   :  { %1629 = vmatpush.bf16.msrb.mxu0 %v1907_v50 }
 0xcaf   :  { %v1466_v16 = vpop.f32.mrf.mxu2 }
 0xcb0   :  { %v1467_v59 = vadd.f32 %v1466_v16, %v1441_v51 }
 0xcb2   :  { %v1471_v6 = vadd.f32 %v1467_v59, %v2335_v35 }
 0xcb4   :  { %v1473_v7 = vsel %vm70_vm0, %v1471_v6, 0.0 }
 0xcb5   :  { %1474 = vadd.xlane.f32.xlu1 %v1473_v7 }
 0xcb7   :  { %v1468_v8 = vpop.f32.mrf.mxu2 }
 0xcb8   :  { %v1469_v9 = vadd.f32 %v1468_v8, %v1441_v51 }
 0xcba   :  { %v1472_v10 = vadd.f32 %v1469_v9, %v2337_v36  ;;  %v1906_v36 = vld [vmem:[%s2552_s3 + $0x18] sm:$0xff] }
 0xcbb   :  { %1546 = vmatpush.bf16.msra.mxu3 %v1906_v36 }
 0xcbc   :  { %v1476_v11 = vsel %vm70_vm0, %v1472_v10, 0.0 }
 0xcbd   :  { %1477 = vadd.xlane.f32.xlu2 %v1476_v11 }
 0xcbf   :  { %1547 = vmatpush.bf16.msra.mxu3 %v1905_v27 }
 0xd28   :  { %v1475_v12 = vpop.xlane.xlu1 %1474 }
 0xd29   :  { %v1479_v13 = vmul.f32 %v1475_v12, %v2276_v39 }
 0xd2b   :  { %v1481_v17 = vsub.f32 %v1471_v6, %v1479_v13 }
 0xd2d   :  { %v1483_v58 = vmul.f32 %v1481_v17, %v1481_v17 }
 0xd2f   :  { %v1485_v18 = vsel %vm70_vm0, %v1483_v58, 0.0 }
 0xd30   :  { %v1478_v19 = vpop.xlane.xlu2 %1477  ;;  %1486 = vadd.xlane.f32.xlu0 %v1485_v18 }
 0xd31   :  { %v1480_v35 = vmul.f32 %v1478_v19, %v2276_v39 }
 0xd33   :  { %v1482_v21 = vsub.f32 %v1472_v10, %v1480_v35 }
 0xd35   :  { %v1484_v22 = vmul.f32 %v1482_v21, %v1482_v21 }
 0xd37   :  { %v1488_v23 = vsel %vm70_vm0, %v1484_v22, 0.0 }
 0xd38   :  { %1489 = vadd.xlane.f32.xlu1 %v1488_v23 }
 0xda3   :  { %v1487_v24 = vpop.xlane.xlu0 %1486 }
 0xda4   :  { %v1491_v25 = vmul.f32 %v1487_v24, %v2276_v39  ;;  %v1573_v24 = vperm.slane %v2345_v38, 5 }
 0xda6   :  { %v1493_v26 = vadd.f32 1e-12, %v1491_v25 }
 0xda8   :  { %2049 = vrsqrt.f32 %v1493_v26  ;;  %vm1501_vm2 = vweird.f32 %v1493_v26 }
 0xdab   :  { %v1490_v42 = vpop.xlane.xlu1 %1489 }
 0xdac   :  { %v1492_v43 = vmul.f32 %v1490_v42, %v2276_v39 }
 0xdae   :  { %v2050_v29 = vpop.eup %2049  ;;  %v1494_v28 = vadd.f32 1e-12, %v1492_v43 }
 0xdaf   :  { %v1496_v44 = vmul.f32 %v2050_v29, %v1493_v26  ;;  %vm1502_vm1 = vweird.f32 %v2050_v29 }
 0xdb0   :  { %2051 = vrsqrt.f32 %v1494_v28  ;;  %vm1503_vm3 = vmor %vm1501_vm2, %vm1502_vm1  ;;  %vm1511_vm7 = vweird.f32 %v1494_v28 }
 0xdb1   :  { %v1497_v30 = vmul.f32 %v2050_v29, %v1496_v44 }
 0xdb3   :  { %v1498_v31 = vmul.f32 0.5, %v1497_v30 }
 0xdb5   :  { %v1499_v33 = vsub.f32 1.5, %v1498_v31 }
 0xdb6   :  { %v2052_v34 = vpop.eup %2051 }
 0xdb7   :  { %v1500_v37 = vmul.f32 %v2050_v29, %v1499_v33  ;;  %v1506_v2 = vmul.f32 %v2052_v34, %v1494_v28  ;;  %vm1512_vm4 = vweird.f32 %v2052_v34 }
 0xdb8   :  { %vm1513_vm8 = vmor %vm1511_vm7, %vm1512_vm4 }
 0xdb9   :  { %v1507_v5 = vmul.f32 %v2052_v34, %v1506_v2  ;;  %v1504_v15 = vsel %vm1503_vm3, %v2050_v29, %v1500_v37 }
 0xdba   :  { %v1515_v3 = vmul.f32 %v1504_v15, %v1481_v17 }
 0xdbb   :  { %v1508_v40 = vmul.f32 0.5, %v1507_v5 }
 0xdbc   :  { %v1518_v48 = vmul.f32 %v1517_v45, %v1515_v3 }
 0xdbd   :  { %v1509_v41 = vsub.f32 1.5, %v1508_v40 }
 0xdbe   :  { %v1521_v55 = vadd.f32 %v1520_v47, %v1518_v48 }
 0xdbf   :  { %v1510_v14 = vmul.f32 %v2052_v34, %v1509_v41 }
 0xdc1   :  { %v1514_v46 = vsel %vm1513_vm8, %v2052_v34, %v1510_v14 }
 0xdc2   :  { %v1516_v49 = vmul.f32 %v1514_v46, %v1482_v21 }
 0xdc4   :  { %v1519_v54 = vmul.f32 %v1517_v45, %v1516_v49 }
 0xdc6   :  { %v1522_v32 = vadd.f32 %v1520_v47, %v1519_v54 }
 0xdc8   :  { %v1523_v56 = vpack.c.bf16 %v1522_v32, %v1521_v55 }
 0xdca   :  { %1854 = vmatmul.msk.bf16.vlgmr.msra.gmra.mxu3 %vm70_vm0, %v1523_v56 }
 0xe4d   :  { %v1549_v1 = vpop.f32.mrf.mxu3 }
 0xe4e   :  { %v1550_v4 = vadd.f32 %v1549_v1, %v1524_v0 }
 0xe50   :  { %v1554_v20 = vmul.f32 %v1550_v4, %v1550_v4 }
 0xe52   :  { %v1556_v51 = vmul.f32 %v1554_v20, %v1550_v4 }
 0xe54   :  { %v1558_v16 = vmul.f32 0.044715, %v1556_v51 }
 0xe55   :  { %v1551_v59 = vpop.f32.mrf.mxu3 }
 0xe56   :  { %v1560_v6 = vadd.f32 %v1558_v16, %v1550_v4  ;;  %v1552_v7 = vadd.f32 %v1551_v59, %v1524_v0 }
 0xe58   :  { %v1562_v8 = vmul.f32 0.7978846, %v1560_v6  ;;  %v1555_v9 = vmul.f32 %v1552_v7, %v1552_v7 }
 0xe5a   :  { %v1557_v10 = vmul.f32 %v1555_v9, %v1552_v7  ;;  %2053 = vtanh.f32 %v1562_v8 }
 0xe5c   :  { %v1559_v11 = vmul.f32 0.044715, %v1557_v10 }
 0xe5e   :  { %v1561_v12 = vadd.f32 %v1559_v11, %v1552_v7 }
 0xe60   :  { %v1563_v13 = vmul.f32 0.7978846, %v1561_v12  ;;  %v2054_v17 = vpop.eup %2053 }
 0xe61   :  { %v1566_v58 = vadd.f32 1.0, %v2054_v17 }
 0xe62   :  { %2055 = vtanh.f32 %v1563_v13 }
 0xe63   :  { %v1568_v19 = vmul.f32 0.5, %v1566_v58 }
 0xe65   :  { %v1570_v22 = vmul.f32 %v1568_v19, %v1550_v4 }
 0xe68   :  { %v2056_v18 = vpop.eup %2055 }
 0xe69   :  { %v1567_v35 = vadd.f32 1.0, %v2056_v18 }
 0xe6b   :  { %v1569_v21 = vmul.f32 0.5, %v1567_v35 }
 0xe6d   :  { %v1571_v23 = vmul.f32 %v1569_v21, %v1552_v7 }
 0xe6f   :  { %v1572_v36 = vpack.c.bf16 %v1571_v23, %v1570_v22 }
 0xe71   :  { %1630 = vmatmul.bf16.vlgmr.msrb.gmra.mxu0 %v1572_v36 }
 0xeee   :  { %v1631_v25 = vpop.f32.mrf.mxu0 }
 0xeef   :  { %v1632_v26 = vadd.f32 %v1631_v25, %v1573_v24 }
 0xef1   :  { %v1636_v27 = vadd.f32 %v1632_v26, %v1521_v55 }
 0xef3   :  { %v1638_v42 = vsel %vm70_vm0, %v1636_v27, 0.0 }
 0xef4   :  { %1639 = vadd.xlane.f32.xlu2 %v1638_v42 }
 0xef6   :  { %v1633_v43 = vpop.f32.mrf.mxu0 }
 0xef7   :  { %v1634_v29 = vadd.f32 %v1633_v43, %v1573_v24 }
 0xef9   :  { %v1637_v28 = vadd.f32 %v1634_v29, %v1522_v32 }
 0xefb   :  { %v1641_v44 = vsel %vm70_vm0, %v1637_v28, 0.0 }
 0xefc   :  { %1642 = vadd.xlane.f32.xlu0 %v1641_v44 }
 0xf67   :  { %v1640_v30 = vpop.xlane.xlu2 %1639 }
 0xf68   :  { %v1644_v31 = vmul.f32 %v1640_v30, %v2276_v39 }
 0xf6a   :  { %v1646_v33 = vsub.f32 %v1636_v27, %v1644_v31 }
 0xf6c   :  { %v1648_v34 = vmul.f32 %v1646_v33, %v1646_v33 }
 0xf6e   :  { %v1650_v37 = vsel %vm70_vm0, %v1648_v34, 0.0 }
 0xf6f   :  { %v1643_v2 = vpop.xlane.xlu0 %1642  ;;  %1651 = vadd.xlane.f32.xlu1 %v1650_v37 }
 0xf70   :  { %v1645_v5 = vmul.f32 %v1643_v2, %v2276_v39 }
 0xf72   :  { %v1647_v15 = vsub.f32 %v1637_v28, %v1645_v5 }
 0xf74   :  { %v1649_v40 = vmul.f32 %v1647_v15, %v1647_v15 }
 0xf76   :  { %v1653_v41 = vsel %vm70_vm0, %v1649_v40, 0.0 }
 0xf77   :  { %1654 = vadd.xlane.f32.xlu2 %v1653_v41 }
 0xfe2   :  { %v1652_v45 = vpop.xlane.xlu1 %1651 }
 0xfe3   :  { %v1656_v3 = vmul.f32 %v1652_v45, %v2276_v39 }
 0xfe5   :  { %v1658_v14 = vadd.f32 1e-12, %v1656_v3 }
 0xfe7   :  { %2057 = vrsqrt.f32 %v1658_v14  ;;  %vm1666_vm10 = vweird.f32 %v1658_v14 }
 0xfea   :  { %v1655_v46 = vpop.xlane.xlu2 %1654 }
 0xfeb   :  { %v1657_v47 = vmul.f32 %v1655_v46, %v2276_v39  ;;  %v1685_v39 = vperm.slane %v2345_v38, 7 }
 0xfed   :  { %v2058_v48 = vpop.eup %2057  ;;  %v1659_v49 = vadd.f32 1e-12, %v1657_v47 }
 0xfee   :  { %v1661_v54 = vmul.f32 %v2058_v48, %v1658_v14  ;;  %vm1667_vm9 = vweird.f32 %v2058_v48 }
 0xfef   :  { %2059 = vrsqrt.f32 %v1659_v49  ;;  %vm1668_vm11 = vmor %vm1666_vm10, %vm1667_vm9  ;;  %vm1676_vm13 = vweird.f32 %v1659_v49 }
 0xff0   :  { %v1662_v55 = vmul.f32 %v2058_v48, %v1661_v54 }
 0xff2   :  { %v1663_v32 = vmul.f32 0.5, %v1662_v55 }
 0xff4   :  { %v1664_v56 = vsub.f32 1.5, %v1663_v32 }
 0xff5   :  { %v2060_v57 = vpop.eup %2059 }
 0xff6   :  { %v1665_v60 = vmul.f32 %v2058_v48, %v1664_v56  ;;  %v1671_v53 = vmul.f32 %v2060_v57, %v1659_v49  ;;  %vm1677_vm12 = vweird.f32 %v2060_v57 }
 0xff7   :  { %vm1678_vm14 = vmor %vm1676_vm13, %vm1677_vm12 }
 0xff8   :  { %v1669_v61 = vsel %vm1668_vm11, %v2058_v48, %v1665_v60  ;;  %v1672_v62 = vmul.f32 %v2060_v57, %v1671_v53 }
 0xff9   :  { %v1680_v63 = vmul.f32 %v1669_v61, %v1646_v33 }
 0xffa   :  { %v1673_v0 = vmul.f32 0.5, %v1672_v62 }
 0xffb   :  { %v1683_v1 = vmul.f32 %v1682_v52, %v1680_v63 }
 0xffc   :  { %v1674_v50 = vsub.f32 1.5, %v1673_v0 }
 0xffd   :  { %v1686_v4 = vadd.f32 %v1685_v39, %v1683_v1 }
 0xffe   :  { %v1675_v20 = vmul.f32 %v2060_v57, %v1674_v50 }
 0xfff   :  { %1688 = vst.msk [vmem:[#allocation2] sm:$0xff] %vm70_vm0, %v1686_v4 }
0x1000   :  { %v1679_v51 = vsel %vm1678_vm14, %v2060_v57, %v1675_v20 }
0x1001   :  { %v1681_v16 = vmul.f32 %v1679_v51, %v1647_v15 }
0x1003   :  { %v1684_v59 = vmul.f32 %v1682_v52, %v1681_v16 }
0x1005   :  { %v1687_v38 = vadd.f32 %v1685_v39, %v1684_v59 }
0x1007   :  { %1689 = vst.msk [vmem:[#allocation2 + $0x8] sm:$0xff] %vm70_vm0, %v1687_v38 }
0x1008   :  { %1702 = dma.vmem_to_hbm [thread:$0]  %s1695_s23, 256, %s1697_s25, [#allocation3], %s2097_s5, %s2097_s5, %s2092_s11  }
0x1009   :  { %2085 = dma.done.wait [#allocation3], 256  }
0x100a   :  { %2086 = vsyncadd [#allocation3], 4294967040 }
0x100b   :  { %1707 = vsyncpa [#allocation3], 1 }

</bundles_post_ra>
